<compile_context>
chip_gen: v6e
topology: v6e:2x2x1
jax: 0.10.0
libtpu: 0.0.40
codegen_flags: <defaults>
</compile_context>

<pallas_src>
import functools

import jax
import jax.numpy as jnp
from jax.experimental import pallas as pl
from jax.experimental.pallas import tpu as pltpu

OUT_PAD = 128  # lane-dense padded output width (real n_out = 3)


def _mlp_kernel(x_ref,
                w1_ref, b1_ref,
                w2_ref, b2_ref,
                w3_ref, b3_ref,
                w4_ref, b4_ref,
                o_ref):
    """Fused 4-layer MLP on one batch tile. Everything lives in VMEM."""
    x = x_ref[...]                                   # (TB, 2)  f32
    w1 = w1_ref[...]                                 # (2, H)   f32

    # Layer 1 (K=2): VPU broadcast-multiply-add — avoids a K=2 MXU pass.
    h = x[:, 0:1] * w1[0:1, :] + x[:, 1:2] * w1[1:2, :] + b1_ref[...]
    h = jnp.maximum(h, 0.0)                          # ReLU, f32

    # Layers 2 & 3: bf16 MXU matmuls, f32 accumulation, f32 epilogue.
    h = jnp.dot(h.astype(jnp.bfloat16), w2_ref[...],
                preferred_element_type=jnp.float32) + b2_ref[...]
    h = jnp.maximum(h, 0.0)

    h = jnp.dot(h.astype(jnp.bfloat16), w3_ref[...],
                preferred_element_type=jnp.float32) + b3_ref[...]
    h = jnp.maximum(h, 0.0)

    # Output layer into a lane-dense (TB, 128) padded slab, then sigmoid (EUP).
    y = jnp.dot(h.astype(jnp.bfloat16), w4_ref[...],
                preferred_element_type=jnp.float32) + b4_ref[...]
    o_ref[...] = jax.nn.sigmoid(y).astype(o_ref.dtype)


@functools.partial(jax.jit, static_argnames=("block_b",))
def mlp_forward(x, params, block_b=256):
    """x: (B, n_in) float32; params: dict of w1..w4 (in,out) and b1..b4."""
    B, n_in = x.shape
    n_out = params["w4"].shape[1]
    assert n_out <= OUT_PAD

    # Pad batch to a multiple of block_b (sliced off at the end).
    pad_b = (-B) % block_b
    x_p = jnp.pad(x, ((0, pad_b), (0, 0))) if pad_b else x
    Bp = B + pad_b

    # Biases as (1, N) rows so they broadcast cleanly inside the kernel (f32).
    b1 = params["b1"].reshape(1, -1)
    b2 = params["b2"].reshape(1, -1)
    b3 = params["b3"].reshape(1, -1)

    # Lane-dense output: zero-pad W4/b4 to 128 columns (padded cols discarded).
    w4p = jnp.pad(params["w4"], ((0, 0), (0, OUT_PAD - n_out)))
    b4p = jnp.pad(params["b4"], (0, OUT_PAD - n_out)).reshape(1, OUT_PAD)

    # bf16 weights for the MXU layers (accumulation stays f32 in the kernel).
    w2 = params["w2"].astype(jnp.bfloat16)
    w3 = params["w3"].astype(jnp.bfloat16)
    w4p = w4p.astype(jnp.bfloat16)

    # Weights/biases are tiny -> pass as full blocks; constant index_map means
    # they are DMA'd once and stay resident across batch-grid steps.
    full = lambda shape: pl.BlockSpec(shape, lambda i: (0, 0))
    grid = (Bp // block_b,)

    out_p = pl.pallas_call(
        _mlp_kernel,
        out_shape=jax.ShapeDtypeStruct((Bp, OUT_PAD), jnp.float32),
        grid_spec=pltpu.PrefetchScalarGridSpec(
            num_scalar_prefetch=0,
            grid=grid,
            in_specs=[
                pl.BlockSpec((block_b, n_in), lambda i: (i, 0)),   # x tile
                full(params["w1"].shape), full(b1.shape),
                full(w2.shape), full(b2.shape),
                full(w3.shape), full(b3.shape),
                full(w4p.shape), full(b4p.shape),
            ],
            out_specs=pl.BlockSpec((block_b, OUT_PAD), lambda i: (i, 0)),
        ),
        compiler_params=pltpu.CompilerParams(
            # Megacore-shard the batch grid on v7x; harmless on 1-TC chips.
            dimension_semantics=("parallel",),
        ),
    )(x_p, params["w1"], b1, w2, b2, w3, b3, w4p, b4p)

    return out_p[:B, :n_out]


def init_params(key, n_in=2, n_hidden=256, n_out=3):
    """Deterministic init mimicking nn.Linear's U(-1/sqrt(fan_in), 1/sqrt(fan_in))."""
    dims = [(n_in, n_hidden), (n_hidden, n_hidden), (n_hidden, n_hidden), (n_hidden, n_out)]
    params = {}
    for idx, (fi, fo) in enumerate(dims, start=1):
        key, kw, kb = jax.random.split(key, 3)
        bound = 1.0 / jnp.sqrt(fi)
        params[f"w{idx}"] = jax.random.uniform(kw, (fi, fo), jnp.float32, -bound, bound)
        params[f"b{idx}"] = jax.random.uniform(kb, (fo,), jnp.float32, -bound, bound)
    return params


def mlp_reference(x, params):
    h = jnp.maximum(x @ params["w1"] + params["b1"], 0.0)
    h = jnp.maximum(h @ params["w2"] + params["b2"], 0.0)
    h = jnp.maximum(h @ params["w3"] + params["b3"], 0.0)
    return jax.nn.sigmoid(h @ params["w4"] + params["b4"])


if __name__ == "__main__":
    key = jax.random.PRNGKey(0)
    kp, kx = jax.random.split(key)

    B, N_IN = 512, 2                     # x: (B, 2) normalized pixel uv coords
    params = init_params(kp, n_in=N_IN, n_hidden=256, n_out=3)
    x = jax.random.uniform(kx, (B, N_IN), jnp.float32)

    out = mlp_forward(x, params, block_b=256)   # grid = (2,)
    out = jax.block_until_ready(out)

    ref = mlp_reference(x, params)
    assert out.shape == (B, 3), out.shape
    # bf16 MXU inputs with f32 accumulation -> loosened tolerance vs f32 reference
    # (sigmoid output, expected max error ~1e-3).
    max_err = float(jnp.max(jnp.abs(out - ref)))
    assert jnp.allclose(out, ref, atol=3e-2, rtol=3e-2), f"mismatch, max_err={max_err}"

    print("KERNEL_OK")
</pallas_src>

<mosaic_0001>
module attributes {stable_mosaic.version = 11 : i64} {
  func.func @_mlp_kernel(%arg0: i32, %arg1: memref<256x2xf32, #tpu.memory_space<vmem>>, %arg2: memref<2x256xf32, #tpu.memory_space<vmem>>, %arg3: memref<1x256xf32, #tpu.memory_space<vmem>>, %arg4: memref<256x256xbf16, #tpu.memory_space<vmem>>, %arg5: memref<1x256xf32, #tpu.memory_space<vmem>>, %arg6: memref<256x256xbf16, #tpu.memory_space<vmem>>, %arg7: memref<1x256xf32, #tpu.memory_space<vmem>>, %arg8: memref<256x128xbf16, #tpu.memory_space<vmem>>, %arg9: memref<1x128xf32, #tpu.memory_space<vmem>>, %arg10: memref<256x128xf32, #tpu.memory_space<vmem>>) attributes {dimension_semantics = [#tpu.dimension_semantics<parallel>], iteration_bounds = array<i64: 2>, scalar_prefetch = 0 : i64, scratch_operands = 0 : i64, tpu.core_type = #tpu.core_type<tc>, window_params = [{transform_indices = @transform_0, window_bounds = array<i64: 256, 2>}, {pipeline_mode = #tpu.pipeline_mode<synchronous>, transform_indices = @transform_1, window_bounds = array<i64: 2, 256>}, {pipeline_mode = #tpu.pipeline_mode<synchronous>, transform_indices = @transform_2, window_bounds = array<i64: 1, 256>}, {pipeline_mode = #tpu.pipeline_mode<synchronous>, transform_indices = @transform_3, window_bounds = array<i64: 256, 256>}, {pipeline_mode = #tpu.pipeline_mode<synchronous>, transform_indices = @transform_4, window_bounds = array<i64: 1, 256>}, {pipeline_mode = #tpu.pipeline_mode<synchronous>, transform_indices = @transform_5, window_bounds = array<i64: 256, 256>}, {pipeline_mode = #tpu.pipeline_mode<synchronous>, transform_indices = @transform_6, window_bounds = array<i64: 1, 256>}, {pipeline_mode = #tpu.pipeline_mode<synchronous>, transform_indices = @transform_7, window_bounds = array<i64: 256, 128>}, {pipeline_mode = #tpu.pipeline_mode<synchronous>, transform_indices = @transform_8, window_bounds = array<i64: 1, 128>}, {transform_indices = @transform_9, window_bounds = array<i64: 256, 128>}]} {
    %c0 = arith.constant 0 : index
    %c0_0 = arith.constant 0 : index
    %0 = vector.load %arg1[%c0, %c0_0] : memref<256x2xf32, #tpu.memory_space<vmem>>, vector<256x2xf32>
    %c0_1 = arith.constant 0 : index
    %c0_2 = arith.constant 0 : index
    %1 = vector.load %arg2[%c0_1, %c0_2] : memref<2x256xf32, #tpu.memory_space<vmem>>, vector<2x256xf32>
    %2 = vector.extract_strided_slice %0 {offsets = [0, 0], sizes = [256, 1], strides = [1, 1]} : vector<256x2xf32> to vector<256x1xf32>
    %3 = vector.extract_strided_slice %1 {offsets = [0, 0], sizes = [1, 256], strides = [1, 1]} : vector<2x256xf32> to vector<1x256xf32>
    %4 = vector.broadcast %2 : vector<256x1xf32> to vector<256x256xf32>
    %5 = vector.broadcast %3 : vector<1x256xf32> to vector<256x256xf32>
    %6 = arith.mulf %4, %5 : vector<256x256xf32>
    %7 = vector.extract_strided_slice %0 {offsets = [0, 1], sizes = [256, 1], strides = [1, 1]} : vector<256x2xf32> to vector<256x1xf32>
    %8 = vector.extract_strided_slice %1 {offsets = [1, 0], sizes = [1, 256], strides = [1, 1]} : vector<2x256xf32> to vector<1x256xf32>
    %9 = vector.broadcast %7 : vector<256x1xf32> to vector<256x256xf32>
    %10 = vector.broadcast %8 : vector<1x256xf32> to vector<256x256xf32>
    %11 = arith.mulf %9, %10 : vector<256x256xf32>
    %12 = arith.addf %6, %11 : vector<256x256xf32>
    %c0_3 = arith.constant 0 : index
    %c0_4 = arith.constant 0 : index
    %13 = vector.load %arg3[%c0_3, %c0_4] : memref<1x256xf32, #tpu.memory_space<vmem>>, vector<1x256xf32>
    %14 = vector.broadcast %13 : vector<1x256xf32> to vector<256x256xf32>
    %15 = arith.addf %12, %14 : vector<256x256xf32>
    %cst = arith.constant 0.000000e+00 : f32
    %16 = vector.broadcast %cst : f32 to vector<256x256xf32>
    %17 = arith.maximumf %15, %16 : vector<256x256xf32>
    %18 = arith.truncf %17 : vector<256x256xf32> to vector<256x256xbf16>
    %c0_5 = arith.constant 0 : index
    %c0_6 = arith.constant 0 : index
    %19 = vector.load %arg4[%c0_5, %c0_6] : memref<256x256xbf16, #tpu.memory_space<vmem>>, vector<256x256xbf16>
    %cst_7 = arith.constant dense<0.000000e+00> : vector<256x256xf32>
    %20 = tpu.matmul %18, %19, %cst_7 {dimension_numbers = #tpu.dot_dimension_numbers<[1], [0], [0], [1], [0, 0, 1, 1], [], []>} : vector<256x256xbf16>, vector<256x256xbf16>, vector<256x256xf32> -> vector<256x256xf32>
    %c0_8 = arith.constant 0 : index
    %c0_9 = arith.constant 0 : index
    %21 = vector.load %arg5[%c0_8, %c0_9] : memref<1x256xf32, #tpu.memory_space<vmem>>, vector<1x256xf32>
    %22 = vector.broadcast %21 : vector<1x256xf32> to vector<256x256xf32>
    %23 = arith.addf %20, %22 : vector<256x256xf32>
    %cst_10 = arith.constant 0.000000e+00 : f32
    %24 = vector.broadcast %cst_10 : f32 to vector<256x256xf32>
    %25 = arith.maximumf %23, %24 : vector<256x256xf32>
    %26 = arith.truncf %25 : vector<256x256xf32> to vector<256x256xbf16>
    %c0_11 = arith.constant 0 : index
    %c0_12 = arith.constant 0 : index
    %27 = vector.load %arg6[%c0_11, %c0_12] : memref<256x256xbf16, #tpu.memory_space<vmem>>, vector<256x256xbf16>
    %cst_13 = arith.constant dense<0.000000e+00> : vector<256x256xf32>
    %28 = tpu.matmul %26, %27, %cst_13 {dimension_numbers = #tpu.dot_dimension_numbers<[1], [0], [0], [1], [0, 0, 1, 1], [], []>} : vector<256x256xbf16>, vector<256x256xbf16>, vector<256x256xf32> -> vector<256x256xf32>
    %c0_14 = arith.constant 0 : index
    %c0_15 = arith.constant 0 : index
    %29 = vector.load %arg7[%c0_14, %c0_15] : memref<1x256xf32, #tpu.memory_space<vmem>>, vector<1x256xf32>
    %30 = vector.broadcast %29 : vector<1x256xf32> to vector<256x256xf32>
    %31 = arith.addf %28, %30 : vector<256x256xf32>
    %cst_16 = arith.constant 0.000000e+00 : f32
    %32 = vector.broadcast %cst_16 : f32 to vector<256x256xf32>
    %33 = arith.maximumf %31, %32 : vector<256x256xf32>
    %34 = arith.truncf %33 : vector<256x256xf32> to vector<256x256xbf16>
    %c0_17 = arith.constant 0 : index
    %c0_18 = arith.constant 0 : index
    %35 = vector.load %arg8[%c0_17, %c0_18] : memref<256x128xbf16, #tpu.memory_space<vmem>>, vector<256x128xbf16>
    %cst_19 = arith.constant dense<0.000000e+00> : vector<256x128xf32>
    %36 = tpu.matmul %34, %35, %cst_19 {dimension_numbers = #tpu.dot_dimension_numbers<[1], [0], [0], [1], [0, 0, 1, 1], [], []>} : vector<256x256xbf16>, vector<256x128xbf16>, vector<256x128xf32> -> vector<256x128xf32>
    %c0_20 = arith.constant 0 : index
    %c0_21 = arith.constant 0 : index
    %37 = vector.load %arg9[%c0_20, %c0_21] : memref<1x128xf32, #tpu.memory_space<vmem>>, vector<1x128xf32>
    %38 = vector.broadcast %37 : vector<1x128xf32> to vector<256x128xf32>
    %39 = arith.addf %36, %38 : vector<256x128xf32>
    %40 = arith.negf %39 : vector<256x128xf32>
    %41 = math.exp %40 : vector<256x128xf32>
    %cst_22 = arith.constant 1.000000e+00 : f32
    %42 = vector.broadcast %cst_22 : f32 to vector<256x128xf32>
    %43 = arith.addf %42, %41 : vector<256x128xf32>
    %44 = arith.divf %42, %43 : vector<256x128xf32>
    %c0_23 = arith.constant 0 : index
    %c0_24 = arith.constant 0 : index
    %45 = vector.load %arg10[%c0_23, %c0_24] : memref<256x128xf32, #tpu.memory_space<vmem>>, vector<256x128xf32>
    tpu.vector_store %arg10[%c0_23, %c0_24], %44 {strides = array<i32>} : memref<256x128xf32, #tpu.memory_space<vmem>>, vector<256x128xf32>,
    return
  }
  func.func @transform_0(%arg0: i32) -> (i32, i32) {
    %c0_i32 = arith.constant 0 : i32
    %c0_i32_0 = arith.constant 0 : i32
    return %arg0, %c0_i32 : i32, i32
  }
  func.func @transform_1(%arg0: i32) -> (i32, i32) {
    %c0_i32 = arith.constant 0 : i32
    %c0_i32_0 = arith.constant 0 : i32
    %c0_i32_1 = arith.constant 0 : i32
    return %c0_i32, %c0_i32_0 : i32, i32
  }
  func.func @transform_2(%arg0: i32) -> (i32, i32) {
    %c0_i32 = arith.constant 0 : i32
    %c0_i32_0 = arith.constant 0 : i32
    %c0_i32_1 = arith.constant 0 : i32
    return %c0_i32, %c0_i32_0 : i32, i32
  }
  func.func @transform_3(%arg0: i32) -> (i32, i32) {
    %c0_i32 = arith.constant 0 : i32
    %c0_i32_0 = arith.constant 0 : i32
    %c0_i32_1 = arith.constant 0 : i32
    return %c0_i32, %c0_i32_0 : i32, i32
  }
  func.func @transform_4(%arg0: i32) -> (i32, i32) {
    %c0_i32 = arith.constant 0 : i32
    %c0_i32_0 = arith.constant 0 : i32
    %c0_i32_1 = arith.constant 0 : i32
    return %c0_i32, %c0_i32_0 : i32, i32
  }
  func.func @transform_5(%arg0: i32) -> (i32, i32) {
    %c0_i32 = arith.constant 0 : i32
    %c0_i32_0 = arith.constant 0 : i32
    %c0_i32_1 = arith.constant 0 : i32
    return %c0_i32, %c0_i32_0 : i32, i32
  }
  func.func @transform_6(%arg0: i32) -> (i32, i32) {
    %c0_i32 = arith.constant 0 : i32
    %c0_i32_0 = arith.constant 0 : i32
    %c0_i32_1 = arith.constant 0 : i32
    return %c0_i32, %c0_i32_0 : i32, i32
  }
  func.func @transform_7(%arg0: i32) -> (i32, i32) {
    %c0_i32 = arith.constant 0 : i32
    %c0_i32_0 = arith.constant 0 : i32
    %c0_i32_1 = arith.constant 0 : i32
    return %c0_i32, %c0_i32_0 : i32, i32
  }
  func.func @transform_8(%arg0: i32) -> (i32, i32) {
    %c0_i32 = arith.constant 0 : i32
    %c0_i32_0 = arith.constant 0 : i32
    %c0_i32_1 = arith.constant 0 : i32
    return %c0_i32, %c0_i32_0 : i32, i32
  }
  func.func @transform_9(%arg0: i32) -> (i32, i32) {
    %c0_i32 = arith.constant 0 : i32
    %c0_i32_0 = arith.constant 0 : i32
    return %arg0, %c0_i32 : i32, i32
  }
}

</mosaic_0001>

<bundles_post_ra>
// kernel: mlp_forward.1
= control target key start
LH: loop header
LB: loop body
LE: loop exit
PB: predicated region body
PF: predicated region fallthrough
CT: control target
= control target key end

     0   :  { %s3240_s30 = smov 0   ;;  %s4026_s0 = inlined_call_operand.vmem [shape: f32[512,2], index: 0, kind: input, shape index: {}]   ;;  %s4027_s1 = inlined_call_operand.vmem [shape: f32[2,256], index: 1, kind: input, shape index: {}]   ;;  %s4028_s2 = inlined_call_operand.vmem [shape: f32[1,256], index: 2, kind: input, shape index: {}]   ;;  %s4029_s3 = inlined_call_operand.vmem [shape: bf16[256,256], index: 3, kind: input, shape index: {}]   ;;  %s4030_s4 = inlined_call_operand.vmem [shape: f32[1,256], index: 4, kind: input, shape index: {}]   ;;  %s4031_s5 = inlined_call_operand.vmem [shape: bf16[256,256], index: 5, kind: input, shape index: {}]   ;;  %s4032_s6 = inlined_call_operand.vmem [shape: f32[1,256], index: 6, kind: input, shape index: {}]   ;;  %s4033_s7 = inlined_call_operand.vmem [shape: bf16[256,128], index: 7, kind: input, shape index: {}]   ;;  %s4034_s8 = inlined_call_operand.vmem [shape: f32[1,128], index: 8, kind: input, shape index: {}]   ;;  %s4035_s9 = inlined_call_operand.vmem [shape: f32[512,128], index: 9, kind: output, shape index: {}]  }
   0x1 LB: > { %s2621_s10 = sadd.s32 4294967295, %s3186_s30   ;;  %p2625_p0 = scmp.ge.s32.totalorder %s3186_s30, 1  ;;  %s3186_s30 = sphi %s3240_s30, %s19_s30  }
   0x2   : > { %p288_p1 = scmp.lt.s32.totalorder %s3186_s30, 3 }
   0x4   : > { %p289_p2 = pnand %p2625_p0, %p288_p1 }
   0x5   : > { %s2626_s11 = sshll.u32 (!%p289_p2), %s2621_s10, 5 }
   0x6   : > { %292 = sbr.rel (%p289_p2) target bundleno = 981 (0x3d5), region = 56  ;;  %p325_p3 = scmp.lt.s32.totalorder (!%p289_p2), %s2626_s11, 63 }
   0xb   : > { %v3188_v0 = vmov 1   ;;  %v3189_v1 = vmov 0   ;;  %v2940_v2 = vld [vmem:[%s4029_s3 + $0x74] ss:$8 sps:$4 sm:$0xff]   ;;  %v2942_v3 = vld [vmem:[%s4029_s3 + $0x70] ss:$8 sps:$4 sm:$0xff]   ;;  %v531_v60 = vlaneseq }
   0xc   : > { %2900 = vset.pattern.permute.xlu1 %v3188_v0  ;;  %2899 = vset.pattern.permute.xlu0 %v3189_v1  ;;  %v2943_v4 = vld [vmem:[%s4029_s3 + $0x64] ss:$8 sps:$4 sm:$0xff]   ;;  %s4037_s11 = smov (!%p325_p3, %s2626_s11), 63  ;;  %v2945_v5 = vld [vmem:[%s4029_s3 + $0x60] ss:$8 sps:$4 sm:$0xff]  }
   0xd   : > { %1263 = vmatprep.subr.bf16.mxu0 %v2940_v2  ;;  %2857 = vmatprep.subr.bf16.mxu1 %v2940_v2  ;;  %s2627_s18 = sshll.u32 %s4037_s11, 3  ;;  %v2946_v6 = vld [vmem:[%s4029_s3 + $0x54] ss:$8 sps:$4 sm:$0xff]   ;;  %v2948_v9 = vld [vmem:[%s4029_s3 + $0x50] ss:$8 sps:$4 sm:$0xff]   ;;  %v532_v61 = vshrl.u32 %v531_v60, 7 }
   0xe   : > { %1264 = vmatpush1.bf16.msra.mxu0 %v2942_v3  ;;  %2873 = vmatpush1.bf16.msra.mxu1 %v2942_v3  ;;  %s3270_s23 = scalar_lea.vmem %s4026_s0, %s2627_s18  ;;  %v2949_v10 = vld [vmem:[%s4029_s3 + $0x44] ss:$8 sps:$4 sm:$0xff]   ;;  %v2951_v12 = vld [vmem:[%s4029_s3 + $0x40] ss:$8 sps:$4 sm:$0xff]   ;;  %v2952_v14 = vld [vmem:[%s4029_s3 + $0x34] ss:$8 sps:$4 sm:$0xff]   ;;  %s3963_s29 = scalar_lea.vmem %s4035_s9, %s2627_s18 }
   0xf   : > { %1265 = vmatprep.subr.bf16.mxu0 %v2943_v4  ;;  %2858 = vmatprep.subr.bf16.mxu1 %v2943_v4  ;;  %v337_v7 = vld [vmem:[%s3270_s23] sm:$0xff]  ;;  %v338_v8 = vld [vmem:[%s3270_s23 + $0x8] sm:$0xff]  ;;  %v339_v11 = vld [vmem:[%s3270_s23 + $0x10] sm:$0xff]  ;;  %v3416_v63 = vsub.s32 1, %v532_v61  ;;  %v747_v2 = vsub.s32 3, %v532_v61  ;;  %v3418_v3 = vsub.s32 0, %v532_v61 }
  0x10   : > { %614 = vperm.xlu1 %2900, %v337_v7   ;;  %372 = vperm.xlu0 %2899, %v337_v7   ;;  %v340_v13 = vld [vmem:[%s3270_s23 + $0x18] sm:$0xff]  ;;  %v2955_v16 = vld [vmem:[%s4029_s3 + $0x24] ss:$8 sps:$4 sm:$0xff]   ;;  %v343_v17 = vld [vmem:[%s3270_s23 + $0x30] sm:$0xff]  ;;  %v537_v4 = vsub.s32 2, %v532_v61 }
  0x11   : > { %v2954_v15 = vld [vmem:[%s4029_s3 + $0x30] ss:$8 sps:$4 sm:$0xff]   ;;  %v2957_v18 = vld [vmem:[%s4029_s3 + $0x20] ss:$8 sps:$4 sm:$0xff]   ;;  %v2958_v19 = vld [vmem:[%s4029_s3 + $0x14] ss:$8 sps:$4 sm:$0xff]  }
  0x12   : > { %1266 = vmatpush1.bf16.msra.mxu0 %v2945_v5  ;;  %2874 = vmatpush1.bf16.msra.mxu1 %v2945_v5  ;;  %v341_v20 = vld [vmem:[%s3270_s23 + $0x20] sm:$0xff]  ;;  %v342_v21 = vld [vmem:[%s3270_s23 + $0x28] sm:$0xff]  ;;  %v2960_v22 = vld [vmem:[%s4029_s3 + $0x10] ss:$8 sps:$4 sm:$0xff]  }
  0x13   : > { %1267 = vmatprep.subr.bf16.mxu0 %v2946_v6  ;;  %2859 = vmatprep.subr.bf16.mxu1 %v2946_v6  ;;  %v2961_v23 = vld [vmem:[%s4029_s3 + $0x4] ss:$8 sps:$4 sm:$0xff]   ;;  %v2963_v24 = vld [vmem:[%s4029_s3] ss:$8 sps:$4 sm:$0xff]   ;;  %v2964_v25 = vld [vmem:[%s4029_s3 + $0xf4] ss:$8 sps:$4 sm:$0xff]  }
  0x14   : > { %618 = vperm.xlu1 %2900, %v338_v8   ;;  %377 = vperm.xlu0 %2899, %v338_v8   ;;  %v2966_v26 = vld [vmem:[%s4029_s3 + $0xf0] ss:$8 sps:$4 sm:$0xff]   ;;  %v346_v27 = vld [vmem:[%s3270_s23 + $0x48] sm:$0xff]  ;;  %v2970_v32 = vld [vmem:[%s4029_s3 + $0xd4] ss:$8 sps:$4 sm:$0xff]  }
  0x15   : > { %v2967_v28 = vld [vmem:[%s4029_s3 + $0xe4] ss:$8 sps:$4 sm:$0xff]   ;;  %v344_v29 = vld [vmem:[%s3270_s23 + $0x38] sm:$0xff]  ;;  %v2969_v30 = vld [vmem:[%s4029_s3 + $0xe0] ss:$8 sps:$4 sm:$0xff]  }
  0x16   : > { %1268 = vmatpush1.bf16.msra.mxu0 %v2948_v9  ;;  %2875 = vmatpush1.bf16.msra.mxu1 %v2948_v9  ;;  %v347_v31 = vld [vmem:[%s3270_s23 + $0x50] sm:$0xff]  ;;  %v2973_v34 = vld [vmem:[%s4029_s3 + $0xc4] ss:$8 sps:$4 sm:$0xff]   ;;  %v2975_v37 = vld [vmem:[%s4029_s3 + $0xc0] ss:$8 sps:$4 sm:$0xff]  }
  0x17   : > { %1269 = vmatprep.subr.bf16.mxu0 %v2949_v10  ;;  %2860 = vmatprep.subr.bf16.mxu1 %v2949_v10  ;;  %v2972_v33 = vld [vmem:[%s4029_s3 + $0xd0] ss:$8 sps:$4 sm:$0xff]   ;;  %v345_v35 = vld [vmem:[%s3270_s23 + $0x40] sm:$0xff]  ;;  %v2976_v38 = vld [vmem:[%s4029_s3 + $0xb4] ss:$8 sps:$4 sm:$0xff]  }
  0x18   : > { %2901 = vset.pattern.permute.xlu1 %v3189_v1  ;;  %382 = vperm.xlu0 %2899, %v339_v11   ;;  %v351_v36 = vld [vmem:[%s3270_s23 + $0x70] sm:$0xff]  ;;  %v350_v39 = vld [vmem:[%s3270_s23 + $0x68] sm:$0xff]  ;;  %v348_v46 = vld [vmem:[%s3270_s23 + $0x58] sm:$0xff] }
  0x19   : > { %387 = vperm.xlu1 %2901, %v340_v13   ;;  %v2978_v40 = vld [vmem:[%s4029_s3 + $0xb0] ss:$8 sps:$4 sm:$0xff]   ;;  %v2979_v41 = vld [vmem:[%s4029_s3 + $0xa4] ss:$8 sps:$4 sm:$0xff]   ;;  %v2981_v42 = vld [vmem:[%s4029_s3 + $0xa0] ss:$8 sps:$4 sm:$0xff]  }
  0x1a   : > { %1270 = vmatpush1.bf16.msra.mxu0 %v2951_v12  ;;  %2876 = vmatpush1.bf16.msra.mxu1 %v2951_v12  ;;  %v2982_v43 = vld [vmem:[%s4029_s3 + $0x94] ss:$8 sps:$4 sm:$0xff]   ;;  %v354_v44 = vld [vmem:[%s3270_s23 + $0x88] sm:$0xff]  ;;  %v2984_v45 = vld [vmem:[%s4029_s3 + $0x90] ss:$8 sps:$4 sm:$0xff]  }
  0x1b   : > { %1271 = vmatprep.subr.bf16.mxu0 %v2952_v14  ;;  %2861 = vmatprep.subr.bf16.mxu1 %v2952_v14  ;;  %v2985_v47 = vld [vmem:[%s4029_s3 + $0x84] ss:$8 sps:$4 sm:$0xff]   ;;  %v355_v48 = vld [vmem:[%s3270_s23 + $0x90] sm:$0xff]  ;;  %v2987_v49 = vld [vmem:[%s4029_s3 + $0x80] ss:$8 sps:$4 sm:$0xff]  }
  0x1c   : > { %2902 = vset.pattern.permute.xlu0 %v3188_v0  ;;  %v349_v50 = vld [vmem:[%s3270_s23 + $0x60] sm:$0xff]  ;;  %v359_v51 = vld [vmem:[%s3270_s23 + $0xb0] sm:$0xff]  ;;  %v358_v52 = vld [vmem:[%s3270_s23 + $0xa8] sm:$0xff] }
  0x1d   : > { %2903 = vset.pattern.permute.xlu1 %v3188_v0  ;;  %622 = vperm.xlu0 %2902, %v339_v11   ;;  %v352_v53 = vld [vmem:[%s3270_s23 + $0x78] sm:$0xff]  ;;  %v3395_v54 = vld [vmem:[%s3270_s23 + $0xc8] sm:$0xff]  ;;  %v363_v55 = vld [vmem:[%s3270_s23 + $0xd0] sm:$0xff] }
  0x1e   : > { %626 = vperm.xlu1 %2903, %v340_v13   ;;  %1272 = vmatpush1.bf16.msra.mxu0 %v2954_v15  ;;  %v353_v56 = vld [vmem:[%s3270_s23 + $0x80] sm:$0xff]  ;;  %v3406_v57 = vld [vmem:[%s3270_s23 + $0xe8] sm:$0xff]  ;;  %v367_v58 = vld [vmem:[%s3270_s23 + $0xf0] sm:$0xff] }
  0x1f   : > { %1273 = vmatprep.subr.bf16.mxu0 %v2955_v16  ;;  %2877 = vmatpush1.bf16.msra.mxu1 %v2954_v15  ;;  %v356_v59 = vld [vmem:[%s3270_s23 + $0x98] sm:$0xff]  ;;  %v357_v62 = vld [vmem:[%s3270_s23 + $0xa0] sm:$0xff] }
  0x20   : > { %2862 = vmatprep.subr.bf16.mxu1 %v2955_v16  ;;  %v369_v5 = vld [vmem:[%s4027_s1] sm:$0xf] }
  0x21   : > { %638 = vperm.xlu0 %2902, %v343_v17   ;;  %v744_v6 = vrot.slane %v369_v5, %v3416_v63  ;;  %v748_v7 = vrot.slane %v369_v5, %v747_v2  ;;  %v534_v8 = vrot.slane %v369_v5, %v3418_v3  ;;  %v538_v9 = vrot.slane %v369_v5, %v537_v4  ;;  %v887_v15 = vld [vmem:[%s4028_s2] sm:$0x3] }
  0x22   : > { %2904 = vset.pattern.permute.xlu1 %v3189_v1  ;;  %1274 = vmatpush1.bf16.msra.mxu0 %v2957_v18 }
  0x23   : > { %392 = vperm.xlu1 %2904, %v341_v20   ;;  %1275 = vmatprep.subr.bf16.mxu0 %v2958_v19  ;;  %v3428_v10 = vrot.slane %v744_v6, %v3416_v63  ;;  %v3431_v11 = vrot.slane %v748_v7, %v3416_v63  ;;  %v3434_v12 = vrot.slane %v534_v8, %v3418_v3 }
  0x24   : > { %2878 = vmatpush1.bf16.msra.mxu1 %v2957_v18  ;;  %v3437_v13 = vrot.slane %v538_v9, %v3418_v3 }
  0x25   : > { %2907 = vset.pattern.permute.xlu0 %v3189_v1  ;;  %2863 = vmatprep.subr.bf16.mxu1 %v2958_v19 }
  0x26   : > { %397 = vperm.xlu0 %2907, %v342_v21   ;;  %1276 = vmatpush1.bf16.msra.mxu0 %v2960_v22 }
  0x27   : > { %2905 = vset.pattern.permute.xlu1 %v3188_v0  ;;  %1277 = vmatprep.subr.bf16.mxu0 %v2961_v23 }
  0x28   : > { %630 = vperm.xlu1 %2905, %v341_v20   ;;  %2879 = vmatpush1.bf16.msra.mxu1 %v2960_v22 }
  0x29   : > { %2864 = vmatprep.subr.bf16.mxu1 %v2961_v23  ;;  %v360_v23 = vld [vmem:[%s3270_s23 + $0xb8] sm:$0xff] }
  0x2a   : > { %402 = vperm.xlu0 %2907, %v343_v17   ;;  %1278 = vmatpush1.bf16.msra.mxu0 %v2963_v24 }
  0x2b   : > { %1279 = vmatprep.subr.bf16.mxu0 %v2964_v25 }
  0x2c   : > { %634 = vperm.xlu1 %2905, %v342_v21   ;;  %2880 = vmatpush1.bf16.msra.mxu1 %v2963_v24  ;;  %v3447_v21 = vrot.slane %v887_v15, %v3418_v3 }
  0x2d   : > { %2865 = vmatprep.subr.bf16.mxu1 %v2964_v25 }
  0x2e   : > { %417 = vperm.xlu0 %2907, %v346_v27   ;;  %1280 = vmatpush2.bf16.msra.mxu0 %v2966_v26 }
  0x2f   : > { %1281 = vmatprep.subr.bf16.mxu0 %v2967_v28 }
  0x30   : > { %2906 = vset.pattern.permute.xlu1 %v3189_v1  ;;  %2881 = vmatpush2.bf16.msra.mxu1 %v2966_v26 }
  0x31   : > { %407 = vperm.xlu1 %2906, %v344_v29   ;;  %2866 = vmatprep.subr.bf16.mxu1 %v2967_v28 }
  0x32   : > { %422 = vperm.xlu0 %2907, %v347_v31   ;;  %1282 = vmatpush2.bf16.msra.mxu0 %v2969_v30 }
  0x33   : > { %1283 = vmatprep.subr.bf16.mxu0 %v2970_v32 }
  0x34   : > { %2882 = vmatpush2.bf16.msra.mxu1 %v2969_v30 }
  0x35   : > { %2908 = vset.pattern.permute.xlu1 %v3188_v0  ;;  %2867 = vmatprep.subr.bf16.mxu1 %v2970_v32 }
  0x36   : > { %642 = vperm.xlu1 %2908, %v344_v29   ;;  %2912 = vset.pattern.permute.xlu0 %v3188_v0 }
  0x37   : > { %654 = vperm.xlu0 %2912, %v347_v31   ;;  %1284 = vmatpush2.bf16.msra.mxu0 %v2972_v33 }
  0x38   : > { %1285 = vmatprep.subr.bf16.mxu0 %v2973_v34  ;;  %2883 = vmatpush2.bf16.msra.mxu1 %v2972_v33 }
  0x39   : > { %2868 = vmatprep.subr.bf16.mxu1 %v2973_v34 }
  0x3a   : > { %2909 = vset.pattern.permute.xlu1 %v3189_v1 }
  0x3b   : > { %412 = vperm.xlu1 %2909, %v345_v35   ;;  %670 = vperm.xlu0 %2912, %v351_v36  }
  0x3c   : > { %1286 = vmatpush2.bf16.msra.mxu0 %v2975_v37  ;;  %2884 = vmatpush2.bf16.msra.mxu1 %v2975_v37 }
  0x3d   : > { %1287 = vmatprep.subr.bf16.mxu0 %v2976_v38  ;;  %2869 = vmatprep.subr.bf16.mxu1 %v2976_v38 }
  0x3f   : > { %2910 = vset.pattern.permute.xlu1 %v3188_v0  ;;  %2917 = vset.pattern.permute.xlu0 %v3189_v1 }
  0x40   : > { %646 = vperm.xlu1 %2910, %v345_v35   ;;  %437 = vperm.xlu0 %2917, %v350_v39  }
  0x41   : > { %1288 = vmatpush2.bf16.msra.mxu0 %v2978_v40  ;;  %2885 = vmatpush2.bf16.msra.mxu1 %v2978_v40 }
  0x42   : > { %1289 = vmatprep.subr.bf16.mxu0 %v2979_v41  ;;  %2870 = vmatprep.subr.bf16.mxu1 %v2979_v41 }
  0x44   : > { %650 = vperm.xlu1 %2910, %v346_v27   ;;  %442 = vperm.xlu0 %2917, %v351_v36   ;;  %v3451_v27 = vrot.slane %v887_v15, %v3416_v63 }
  0x45   : > { %1290 = vmatpush2.bf16.msra.mxu0 %v2981_v42  ;;  %2886 = vmatpush2.bf16.msra.mxu1 %v2981_v42 }
  0x46   : > { %1291 = vmatprep.subr.bf16.mxu0 %v2982_v43  ;;  %2871 = vmatprep.subr.bf16.mxu1 %v2982_v43 }
  0x48   : > { %2911 = vset.pattern.permute.xlu1 %v3189_v1  ;;  %457 = vperm.xlu0 %2917, %v354_v44  }
  0x49   : > { %427 = vperm.xlu1 %2911, %v348_v46   ;;  %1292 = vmatpush2.bf16.msra.mxu0 %v2984_v45 }
  0x4a   : > { %1293 = vmatprep.subr.bf16.mxu0 %v2985_v47  ;;  %2887 = vmatpush2.bf16.msra.mxu1 %v2984_v45 }
  0x4b   : > { %2872 = vmatprep.subr.bf16.mxu1 %v2985_v47  ;;  %v361_v47 = vld [vmem:[%s3270_s23 + $0xc0] sm:$0xff] }
  0x4c   : > { %462 = vperm.xlu0 %2917, %v355_v48  }
  0x4d   : > { %2913 = vset.pattern.permute.xlu1 %v3188_v0  ;;  %1294 = vmatpush2.bf16.msra.mxu0 %v2987_v49 }
  0x4e   : > { %658 = vperm.xlu1 %2913, %v348_v46   ;;  %2888 = vmatpush2.bf16.msra.mxu1 %v2987_v49 }
  0x50   : > { %2922 = vset.pattern.permute.xlu0 %v3188_v0 }
  0x51   : > { %686 = vperm.xlu0 %2922, %v355_v48  }
  0x52   : > { %2914 = vset.pattern.permute.xlu1 %v3189_v1 }
  0x53   : > { %432 = vperm.xlu1 %2914, %v349_v50  }
  0x55   : > { %702 = vperm.xlu0 %2922, %v359_v51  }
  0x57   : > { %2915 = vset.pattern.permute.xlu1 %v3188_v0 }
  0x58   : > { %662 = vperm.xlu1 %2915, %v349_v50  }
  0x59   : > { %2927 = vset.pattern.permute.xlu0 %v3189_v1 }
  0x5a   : > { %477 = vperm.xlu0 %2927, %v358_v52  }
  0x5c   : > { %666 = vperm.xlu1 %2915, %v350_v39  }
  0x5e   : > { %482 = vperm.xlu0 %2927, %v359_v51  }
  0x60   : > { %2916 = vset.pattern.permute.xlu1 %v3189_v1 }
  0x61   : > { %447 = vperm.xlu1 %2916, %v352_v53  }
  0x62   : > { %497 = vperm.xlu0 %2927, %v3395_v54  }
  0x65   : > { %2918 = vset.pattern.permute.xlu1 %v3188_v0 }
  0x66   : > { %674 = vperm.xlu1 %2918, %v352_v53   ;;  %2932 = vset.pattern.permute.xlu0 %v3188_v0 }
  0x67   : > { %718 = vperm.xlu0 %2932, %v363_v55  }
  0x6a   : > { %2919 = vset.pattern.permute.xlu1 %v3189_v1 }
  0x6b   : > { %452 = vperm.xlu1 %2919, %v353_v56   ;;  %2933 = vset.pattern.permute.xlu0 %v3189_v1 }
  0x6c   : > { %502 = vperm.xlu0 %2933, %v363_v55  }
  0x6f   : > { %2920 = vset.pattern.permute.xlu1 %v3188_v0 }
  0x70   : > { %678 = vperm.xlu1 %2920, %v353_v56   ;;  %517 = vperm.xlu0 %2933, %v3406_v57  }
  0x74   : > { %682 = vperm.xlu1 %2920, %v354_v44   ;;  %522 = vperm.xlu0 %2933, %v367_v58  }
  0x78   : > { %2921 = vset.pattern.permute.xlu1 %v3189_v1  ;;  %2938 = vset.pattern.permute.xlu0 %v3188_v0 }
  0x79   : > { %467 = vperm.xlu1 %2921, %v356_v59   ;;  %734 = vperm.xlu0 %2938, %v367_v58  }
  0x7d   : > { %2923 = vset.pattern.permute.xlu1 %v3188_v0 }
  0x7e   : > { %690 = vperm.xlu1 %2923, %v356_v59  }
  0x82   : > { %2924 = vset.pattern.permute.xlu1 %v3189_v1 }
  0x83   : > { %472 = vperm.xlu1 %2924, %v357_v62  }
  0x87   : > { %2925 = vset.pattern.permute.xlu1 %v3188_v0 }
  0x88   : > { %694 = vperm.xlu1 %2925, %v357_v62  }
  0x8b   : > { %v615_v14 = vpop.permute.xlu1 %614  ;;  %v373_v16 = vpop.permute.xlu0 %372 }
  0x8c   : > { %v759_v17 = vmul.f32 %v3428_v10, %v615_v14  ;;  %v760_v18 = vmul.f32 %v3431_v11, %v615_v14  ;;  %v549_v19 = vmul.f32 %v3434_v12, %v373_v16  ;;  %v550_v20 = vmul.f32 %v3437_v13, %v373_v16  ;;  %698 = vperm.xlu1 %2925, %v358_v52  }
  0x8e   : > { %v823_v22 = vadd.f32 %v759_v17, %v549_v19  ;;  %v824_v24 = vadd.f32 %v760_v18, %v550_v20 }
  0x8f   : > { %v619_v25 = vpop.permute.xlu1 %618  ;;  %v378_v26 = vpop.permute.xlu0 %377 }
  0x90   : > { %v761_v28 = vmul.f32 %v3428_v10, %v619_v25  ;;  %v762_v29 = vmul.f32 %v3431_v11, %v619_v25  ;;  %v551_v30 = vmul.f32 %v3434_v12, %v378_v26  ;;  %2926 = vset.pattern.permute.xlu1 %v3189_v1  ;;  %v552_v31 = vmul.f32 %v3437_v13, %v378_v26  ;;  %v2990_v26 = vld [vmem:[%s4031_s5 + $0x74] ss:$8 sps:$4 sm:$0xff]  }
  0x91   : > { %487 = vperm.xlu1 %2926, %v360_v23   ;;  %v899_v32 = vadd.f32 %v3447_v21, %v823_v22  ;;  %v900_v36 = vadd.f32 %v3451_v27, %v824_v24  ;;  %1756 = vmatprep.subr.bf16.mxu1 %v2990_v26 }
  0x92   : > { %v825_v33 = vadd.f32 %v761_v28, %v551_v30  ;;  %v826_v34 = vadd.f32 %v762_v29, %v552_v31 }
  0x93   : > { %v383_v35 = vpop.permute.xlu0 %382  ;;  %v963_v40 = vmax.f32 %v899_v32, 0.0  ;;  %v964_v44 = vmax.f32 %v900_v36, 0.0  ;;  %v364_v32 = vld [vmem:[%s3270_s23 + $0xd8] sm:$0xff] }
  0x94   : > { %v901_v37 = vadd.f32 %v3447_v21, %v825_v33  ;;  %v388_v38 = vpop.permute.xlu1 %387  ;;  %v902_v39 = vadd.f32 %v3451_v27, %v826_v34  ;;  %v553_v42 = vmul.f32 %v3434_v12, %v383_v35  ;;  %v554_v43 = vmul.f32 %v3437_v13, %v383_v35 }
  0x95   : > { %2928 = vset.pattern.permute.xlu1 %v3188_v0  ;;  %v555_v53 = vmul.f32 %v3434_v12, %v388_v38  ;;  %v556_v55 = vmul.f32 %v3437_v13, %v388_v38 }
  0x96   : > { %706 = vperm.xlu1 %2928, %v360_v23   ;;  %v965_v41 = vmax.f32 %v901_v37, 0.0  ;;  %v966_v45 = vmax.f32 %v902_v39, 0.0 }
  0x98   : > { %v623_v46 = vpop.permute.xlu0 %622  ;;  %v1027_v48 = vpack.c.bf16 %v965_v41, %v963_v40  ;;  %v1028_v52 = vpack.c.bf16 %v966_v45, %v964_v44 }
  0x99   : > { %v627_v49 = vpop.permute.xlu1 %626  ;;  %v763_v50 = vmul.f32 %v3428_v10, %v623_v46  ;;  %v764_v51 = vmul.f32 %v3431_v11, %v623_v46 }
  0x9a   : > { %v765_v56 = vmul.f32 %v3428_v10, %v627_v49  ;;  %v766_v58 = vmul.f32 %v3431_v11, %v627_v49  ;;  %2929 = vset.pattern.permute.xlu1 %v3189_v1  ;;  %1295 = vmatprep.mubr.bf16.mxu0 %v1028_v52 }
  0x9b   : > { %v827_v59 = vadd.f32 %v763_v50, %v553_v42  ;;  %v828_v60 = vadd.f32 %v764_v51, %v554_v43  ;;  %492 = vperm.xlu1 %2929, %v361_v47   ;;  %1296 = vmatmul.mubr.bf16.vlgmr.msra.gmra.mxu0 %v1027_v48 }
  0x9c   : > { %v829_v61 = vadd.f32 %v765_v56, %v555_v53  ;;  %v830_v62 = vadd.f32 %v766_v58, %v556_v55  ;;  %v639_v2 = vpop.permute.xlu0 %638  ;;  %v365_v55 = vld [vmem:[%s3270_s23 + $0xe0] sm:$0xff] }
  0x9d   : > { %v903_v4 = vadd.f32 %v3447_v21, %v827_v59  ;;  %v904_v5 = vadd.f32 %v3451_v27, %v828_v60  ;;  %v771_v36 = vmul.f32 %v3428_v10, %v639_v2  ;;  %v772_v37 = vmul.f32 %v3431_v11, %v639_v2 }
  0x9e   : > { %v905_v6 = vadd.f32 %v3447_v21, %v829_v61  ;;  %v906_v7 = vadd.f32 %v3451_v27, %v830_v62  ;;  %v393_v8 = vpop.permute.xlu1 %392 }
  0x9f   : > { %2930 = vset.pattern.permute.xlu1 %v3188_v0  ;;  %v968_v9 = vmax.f32 %v904_v5, 0.0  ;;  %v967_v14 = vmax.f32 %v903_v4, 0.0  ;;  %v557_v20 = vmul.f32 %v3434_v12, %v393_v8  ;;  %v558_v23 = vmul.f32 %v3437_v13, %v393_v8 }
  0xa0   : > { %710 = vperm.xlu1 %2930, %v361_v47   ;;  %v970_v15 = vmax.f32 %v906_v7, 0.0  ;;  %v969_v16 = vmax.f32 %v905_v6, 0.0 }
  0xa1   : > { %v398_v19 = vpop.permute.xlu0 %397 }
  0xa2   : > { %v1030_v17 = vpack.c.bf16 %v970_v15, %v968_v9  ;;  %v1029_v18 = vpack.c.bf16 %v969_v16, %v967_v14  ;;  %v559_v30 = vmul.f32 %v3434_v12, %v398_v19  ;;  %v560_v31 = vmul.f32 %v3437_v13, %v398_v19 }
  0xa3   : > { %v631_v22 = vpop.permute.xlu1 %630 }
  0xa4   : > { %v767_v24 = vmul.f32 %v3428_v10, %v631_v22  ;;  %v768_v25 = vmul.f32 %v3431_v11, %v631_v22  ;;  %714 = vperm.xlu1 %2930, %v3395_v54   ;;  %1305 = vmatprep.mubr.bf16.mxu0 %v1030_v17 }
  0xa5   : > { %1306 = vmatmul.mubr.bf16.gmra.mxu0 %v1029_v18  ;;  %v403_v33 = vpop.permute.xlu0 %402 }
  0xa6   : > { %v831_v28 = vadd.f32 %v767_v24, %v557_v20  ;;  %v832_v29 = vadd.f32 %v768_v25, %v558_v23  ;;  %v561_v38 = vmul.f32 %v3434_v12, %v403_v33  ;;  %v562_v39 = vmul.f32 %v3437_v13, %v403_v33  ;;  %v368_v33 = vld [vmem:[%s3270_s23 + $0xf8] sm:$0xff] }
  0xa7   : > { %v635_v34 = vpop.permute.xlu1 %634 }
  0xa8   : > { %v769_v35 = vmul.f32 %v3428_v10, %v635_v34  ;;  %v770_v54 = vmul.f32 %v3431_v11, %v635_v34  ;;  %2931 = vset.pattern.permute.xlu1 %v3189_v1  ;;  %v907_v40 = vadd.f32 %v3447_v21, %v831_v28  ;;  %v908_v41 = vadd.f32 %v3451_v27, %v832_v29 }
  0xa9   : > { %507 = vperm.xlu1 %2931, %v364_v32   ;;  %v835_v47 = vadd.f32 %v771_v36, %v561_v38  ;;  %v836_v48 = vadd.f32 %v772_v37, %v562_v39  ;;  %v418_v7 = vpop.permute.xlu0 %417 }
  0xaa   : > { %v833_v42 = vadd.f32 %v769_v35, %v559_v30  ;;  %v834_v43 = vadd.f32 %v770_v54, %v560_v31  ;;  %v972_v49 = vmax.f32 %v908_v41, 0.0  ;;  %v971_v51 = vmax.f32 %v907_v40, 0.0 }
  0xab   : > { %v911_v60 = vadd.f32 %v3447_v21, %v835_v47  ;;  %v912_v61 = vadd.f32 %v3451_v27, %v836_v48  ;;  %v567_v31 = vmul.f32 %v3434_v12, %v418_v7 }
  0xac   : > { %v909_v44 = vadd.f32 %v3447_v21, %v833_v42  ;;  %v910_v45 = vadd.f32 %v3451_v27, %v834_v43  ;;  %v408_v46 = vpop.permute.xlu1 %407 }
  0xad   : > { %2934 = vset.pattern.permute.xlu1 %v3188_v0  ;;  %v563_v58 = vmul.f32 %v3434_v12, %v408_v46  ;;  %v564_v62 = vmul.f32 %v3437_v13, %v408_v46  ;;  %v976_v15 = vmax.f32 %v912_v61, 0.0  ;;  %v975_v16 = vmax.f32 %v911_v60, 0.0  ;;  %v423_v19 = vpop.permute.xlu0 %422 }
  0xae   : > { %722 = vperm.xlu1 %2934, %v364_v32   ;;  %v974_v50 = vmax.f32 %v910_v45, 0.0  ;;  %v973_v52 = vmax.f32 %v909_v44, 0.0  ;;  %v568_v32 = vmul.f32 %v3437_v13, %v418_v7  ;;  %v570_v37 = vmul.f32 %v3437_v13, %v423_v19 }
  0xb0   : > { %v1032_v53 = vpack.c.bf16 %v974_v50, %v972_v49  ;;  %v1031_v56 = vpack.c.bf16 %v973_v52, %v971_v51 }
  0xb1   : > { %v643_v59 = vpop.permute.xlu1 %642 }
  0xb2   : > { %v773_v2 = vmul.f32 %v3428_v10, %v643_v59  ;;  %v774_v4 = vmul.f32 %v3431_v11, %v643_v59  ;;  %2935 = vset.pattern.permute.xlu1 %v3189_v1  ;;  %1315 = vmatprep.mubr.bf16.mxu0 %v1032_v53  ;;  %v655_v34 = vpop.permute.xlu0 %654 }
  0xb3   : > { %512 = vperm.xlu1 %2935, %v365_v55   ;;  %1316 = vmatmul.mubr.bf16.gmra.mxu0 %v1031_v56  ;;  %v779_v38 = vmul.f32 %v3428_v10, %v655_v34  ;;  %v780_v39 = vmul.f32 %v3431_v11, %v655_v34 }
  0xb4   : > { %v837_v5 = vadd.f32 %v773_v2, %v563_v58  ;;  %v838_v6 = vadd.f32 %v774_v4, %v564_v62 }
  0xb5   : > { %v844_v47 = vadd.f32 %v780_v39, %v570_v37 }
  0xb6   : > { %v913_v8 = vadd.f32 %v3447_v21, %v837_v5  ;;  %v914_v9 = vadd.f32 %v3451_v27, %v838_v6  ;;  %v413_v14 = vpop.permute.xlu1 %412  ;;  %v671_v4 = vpop.permute.xlu0 %670 }
  0xb7   : > { %2936 = vset.pattern.permute.xlu1 %v3188_v0  ;;  %v565_v23 = vmul.f32 %v3434_v12, %v413_v14  ;;  %v566_v25 = vmul.f32 %v3437_v13, %v413_v14  ;;  %v920_v58 = vadd.f32 %v3451_v27, %v844_v47  ;;  %v787_v34 = vmul.f32 %v3428_v10, %v671_v4 }
  0xb8   : > { %726 = vperm.xlu1 %2936, %v365_v55   ;;  %v978_v17 = vmax.f32 %v914_v9, 0.0  ;;  %v977_v18 = vmax.f32 %v913_v8, 0.0 }
  0xb9   : > { %v984_v8 = vmax.f32 %v920_v58, 0.0 }
  0xba   : > { %v1034_v20 = vpack.c.bf16 %v978_v17, %v976_v15  ;;  %v1033_v22 = vpack.c.bf16 %v977_v18, %v975_v16 }
  0xbb   : > { %v647_v24 = vpop.permute.xlu1 %646  ;;  %v438_v18 = vpop.permute.xlu0 %437 }
  0xbc   : > { %v775_v26 = vmul.f32 %v3428_v10, %v647_v24  ;;  %v776_v28 = vmul.f32 %v3431_v11, %v647_v24  ;;  %730 = vperm.xlu1 %2936, %v3406_v57   ;;  %1325 = vmatprep.mubr.bf16.mxu0 %v1034_v20  ;;  %v569_v57 = vmul.f32 %v3434_v12, %v423_v19 }
  0xbd   : > { %1326 = vmatmul.mubr.bf16.gmra.mxu0 %v1033_v22 }
  0xbe   : > { %v839_v29 = vadd.f32 %v775_v26, %v565_v23  ;;  %v840_v30 = vadd.f32 %v776_v28, %v566_v25  ;;  %v843_v46 = vadd.f32 %v779_v38, %v569_v57  ;;  %v575_v28 = vmul.f32 %v3434_v12, %v438_v18 }
  0xbf   : > { %v651_v35 = vpop.permute.xlu1 %650 }
  0xc0   : > { %v777_v54 = vmul.f32 %v3428_v10, %v651_v35  ;;  %v778_v36 = vmul.f32 %v3431_v11, %v651_v35  ;;  %2937 = vset.pattern.permute.xlu1 %v3189_v1  ;;  %v915_v40 = vadd.f32 %v3447_v21, %v839_v29  ;;  %v916_v41 = vadd.f32 %v3451_v27, %v840_v30  ;;  %v443_v30 = vpop.permute.xlu0 %442 }
  0xc1   : > { %527 = vperm.xlu1 %2937, %v368_v33   ;;  %v919_v56 = vadd.f32 %v3447_v21, %v843_v46  ;;  %v576_v29 = vmul.f32 %v3437_v13, %v438_v18  ;;  %v788_v35 = vmul.f32 %v3431_v11, %v671_v4 }
  0xc2   : > { %v841_v42 = vadd.f32 %v777_v54, %v567_v31  ;;  %v842_v43 = vadd.f32 %v778_v36, %v568_v32  ;;  %v980_v48 = vmax.f32 %v916_v41, 0.0  ;;  %v979_v50 = vmax.f32 %v915_v40, 0.0 }
  0xc3   : > { %v983_v9 = vmax.f32 %v919_v56, 0.0  ;;  %v577_v54 = vmul.f32 %v3434_v12, %v443_v30  ;;  %v578_v36 = vmul.f32 %v3437_v13, %v443_v30 }
  0xc4   : > { %v917_v44 = vadd.f32 %v3447_v21, %v841_v42  ;;  %v918_v45 = vadd.f32 %v3451_v27, %v842_v43  ;;  %v428_v1 = vpop.permute.xlu1 %427 }
  0xc5   : > { %2939 = vset.pattern.permute.xlu1 %v3188_v0  ;;  %v571_v59 = vmul.f32 %v3434_v12, %v428_v1  ;;  %v572_v60 = vmul.f32 %v3437_v13, %v428_v1  ;;  %v851_v43 = vadd.f32 %v787_v34, %v577_v54 }
  0xc6   : > { %738 = vperm.xlu1 %2939, %v368_v33   ;;  %v982_v49 = vmax.f32 %v918_v45, 0.0  ;;  %v981_v51 = vmax.f32 %v917_v44, 0.0  ;;  %v852_v44 = vadd.f32 %v788_v35, %v578_v36 }
  0xc8   : > { %v1036_v52 = vpack.c.bf16 %v982_v49, %v980_v48  ;;  %v1035_v53 = vpack.c.bf16 %v981_v51, %v979_v50  ;;  %v927_v51 = vadd.f32 %v3447_v21, %v851_v43 }
  0xc9   : > { %v659_v55 = vpop.permute.xlu1 %658 }
  0xca   : > { %v781_v0 = vmul.f32 %v3428_v10, %v659_v55  ;;  %v782_v61 = vmul.f32 %v3431_v11, %v659_v55  ;;  %1335 = vmatprep.mubr.bf16.mxu0 %v1036_v52  ;;  %v928_v52 = vadd.f32 %v3451_v27, %v852_v44 }
  0xcb   : > { %1336 = vmatmul.mubr.bf16.gmra.mxu0 %v1035_v53 }
  0xcc   : > { %v845_v62 = vadd.f32 %v781_v0, %v571_v59  ;;  %v846_v2 = vadd.f32 %v782_v61, %v572_v60  ;;  %v458_v0 = vpop.permute.xlu0 %457  ;;  %v992_v4 = vmax.f32 %v928_v52, 0.0 }
  0xce   : > { %v921_v5 = vadd.f32 %v3447_v21, %v845_v62  ;;  %v922_v6 = vadd.f32 %v3451_v27, %v846_v2  ;;  %v433_v7 = vpop.permute.xlu1 %432 }
  0xcf   : > { %v573_v20 = vmul.f32 %v3434_v12, %v433_v7  ;;  %v574_v22 = vmul.f32 %v3437_v13, %v433_v7 }
  0xd0   : > { %v986_v14 = vmax.f32 %v922_v6, 0.0  ;;  %v985_v15 = vmax.f32 %v921_v5, 0.0  ;;  %v991_v5 = vmax.f32 %v927_v51, 0.0 }
  0xd2   : > { %v1038_v16 = vpack.c.bf16 %v986_v14, %v984_v8  ;;  %v1037_v17 = vpack.c.bf16 %v985_v15, %v983_v9  ;;  %v463_v8 = vpop.permute.xlu0 %462 }
  0xd3   : > { %v663_v19 = vpop.permute.xlu1 %662  ;;  %v585_v30 = vmul.f32 %v3434_v12, %v463_v8 }
  0xd4   : > { %v783_v23 = vmul.f32 %v3428_v10, %v663_v19  ;;  %v784_v24 = vmul.f32 %v3431_v11, %v663_v19  ;;  %1345 = vmatprep.mubr.bf16.mxu0 %v1038_v16 }
  0xd5   : > { %1346 = vmatmul.mubr.bf16.gmra.mxu0 %v1037_v17 }
  0xd6   : > { %v847_v25 = vadd.f32 %v783_v23, %v573_v20  ;;  %v848_v26 = vadd.f32 %v784_v24, %v574_v22  ;;  %v583_v23 = vmul.f32 %v3434_v12, %v458_v0  ;;  %v584_v24 = vmul.f32 %v3437_v13, %v458_v0  ;;  %v2996_v0 = vld [vmem:[%s4031_s5 + $0x54] ss:$8 sps:$4 sm:$0xff]  }
  0xd7   : > { %v667_v31 = vpop.permute.xlu1 %666 }
  0xd8   : > { %v785_v32 = vmul.f32 %v3428_v10, %v667_v31  ;;  %v786_v33 = vmul.f32 %v3431_v11, %v667_v31  ;;  %v923_v57 = vadd.f32 %v3447_v21, %v847_v25  ;;  %v924_v37 = vadd.f32 %v3451_v27, %v848_v26  ;;  %v687_v25 = vpop.permute.xlu0 %686 }
  0xd9   : > { %v586_v31 = vmul.f32 %v3437_v13, %v463_v8  ;;  %v2994_v8 = vld [vmem:[%s4031_s5 + $0x50] ss:$8 sps:$4 sm:$0xff]  }
  0xda   : > { %v849_v38 = vadd.f32 %v785_v32, %v575_v28  ;;  %v850_v39 = vadd.f32 %v786_v33, %v576_v29  ;;  %v988_v45 = vmax.f32 %v924_v37, 0.0  ;;  %v987_v46 = vmax.f32 %v923_v57, 0.0 }
  0xdb   : > { %v795_v32 = vmul.f32 %v3428_v10, %v687_v25  ;;  %v796_v33 = vmul.f32 %v3431_v11, %v687_v25 }
  0xdc   : > { %v925_v40 = vadd.f32 %v3447_v21, %v849_v38  ;;  %v926_v41 = vadd.f32 %v3451_v27, %v850_v39  ;;  %v448_v42 = vpop.permute.xlu1 %447 }
  0xdd   : > { %v579_v53 = vmul.f32 %v3434_v12, %v448_v42  ;;  %v580_v55 = vmul.f32 %v3437_v13, %v448_v42  ;;  %v859_v39 = vadd.f32 %v795_v32, %v585_v30 }
  0xde   : > { %v990_v1 = vmax.f32 %v926_v41, 0.0  ;;  %v989_v47 = vmax.f32 %v925_v40, 0.0  ;;  %v860_v40 = vadd.f32 %v796_v33, %v586_v31 }
  0xe0   : > { %v1040_v48 = vpack.c.bf16 %v990_v1, %v988_v45  ;;  %v1039_v49 = vpack.c.bf16 %v989_v47, %v987_v46  ;;  %v2988_v46 = vld [vmem:[%s4031_s5 + $0x70] ss:$8 sps:$4 sm:$0xff]  }
  0xe1   : > { %v675_v50 = vpop.permute.xlu1 %674 }
  0xe2   : > { %v789_v56 = vmul.f32 %v3428_v10, %v675_v50  ;;  %v790_v58 = vmul.f32 %v3431_v11, %v675_v50  ;;  %1355 = vmatprep.mubr.bf16.mxu0 %v1040_v48  ;;  %v935_v48 = vadd.f32 %v3447_v21, %v859_v39  ;;  %v2993_v50 = vld [vmem:[%s4031_s5 + $0x64] ss:$8 sps:$4 sm:$0xff]  }
  0xe3   : > { %1356 = vmatmul.mubr.bf16.gmra.mxu0 %v1039_v49  ;;  %v936_v49 = vadd.f32 %v3451_v27, %v860_v40 }
  0xe4   : > { %v853_v59 = vadd.f32 %v789_v56, %v579_v53  ;;  %v854_v60 = vadd.f32 %v790_v58, %v580_v55 }
  0xe6   : > { %v929_v61 = vadd.f32 %v3447_v21, %v853_v59  ;;  %v930_v62 = vadd.f32 %v3451_v27, %v854_v60  ;;  %v453_v2 = vpop.permute.xlu1 %452  ;;  %v703_v59 = vpop.permute.xlu0 %702  ;;  %v2991_v60 = vld [vmem:[%s4031_s5 + $0x60] ss:$8 sps:$4 sm:$0xff]  }
  0xe7   : > { %v581_v16 = vmul.f32 %v3434_v12, %v453_v2  ;;  %v582_v17 = vmul.f32 %v3437_v13, %v453_v2 }
  0xe8   : > { %v994_v6 = vmax.f32 %v930_v62, 0.0  ;;  %v993_v7 = vmax.f32 %v929_v61, 0.0 }
  0xea   : > { %v1042_v9 = vpack.c.bf16 %v994_v6, %v992_v4  ;;  %v1041_v14 = vpack.c.bf16 %v993_v7, %v991_v5  ;;  %v1000_v4 = vmax.f32 %v936_v49, 0.0  ;;  %v999_v5 = vmax.f32 %v935_v48, 0.0 }
  0xeb   : > { %v679_v15 = vpop.permute.xlu1 %678 }
  0xec   : > { %v791_v18 = vmul.f32 %v3428_v10, %v679_v15  ;;  %v792_v19 = vmul.f32 %v3431_v11, %v679_v15  ;;  %1365 = vmatprep.mubr.bf16.mxu0 %v1042_v9  ;;  %v2999_v9 = vld [vmem:[%s4031_s5 + $0x44] ss:$8 sps:$4 sm:$0xff]  }
  0xed   : > { %1366 = vmatmul.mubr.bf16.gmra.mxu0 %v1041_v14 }
  0xee   : > { %v855_v20 = vadd.f32 %v791_v18, %v581_v16  ;;  %v856_v22 = vadd.f32 %v792_v19, %v582_v17  ;;  %v478_v16 = vpop.permute.xlu0 %477 }
  0xef   : > { %v683_v26 = vpop.permute.xlu1 %682 }
  0xf0   : > { %v793_v28 = vmul.f32 %v3428_v10, %v683_v26  ;;  %v794_v29 = vmul.f32 %v3431_v11, %v683_v26  ;;  %v931_v34 = vadd.f32 %v3447_v21, %v855_v20  ;;  %v932_v36 = vadd.f32 %v3451_v27, %v856_v22 }
  0xf2   : > { %v857_v35 = vadd.f32 %v793_v28, %v583_v23  ;;  %v858_v54 = vadd.f32 %v794_v29, %v584_v24  ;;  %v996_v41 = vmax.f32 %v932_v36, 0.0  ;;  %v995_v43 = vmax.f32 %v931_v34, 0.0  ;;  %v2997_v23 = vld [vmem:[%s4031_s5 + $0x40] ss:$8 sps:$4 sm:$0xff]   ;;  %v3002_v24 = vld [vmem:[%s4031_s5 + $0x34] ss:$8 sps:$4 sm:$0xff]   ;;  %v483_v30 = vpop.permute.xlu0 %482 }
  0xf3   : > { %v591_v28 = vmul.f32 %v3434_v12, %v478_v16  ;;  %v592_v29 = vmul.f32 %v3437_v13, %v478_v16  ;;  %v3000_v34 = vld [vmem:[%s4031_s5 + $0x30] ss:$8 sps:$4 sm:$0xff]   ;;  %v593_v36 = vmul.f32 %v3434_v12, %v483_v30 }
  0xf4   : > { %v933_v57 = vadd.f32 %v3447_v21, %v857_v35  ;;  %v468_v37 = vpop.permute.xlu1 %467  ;;  %v934_v38 = vadd.f32 %v3451_v27, %v858_v54  ;;  %v803_v35 = vmul.f32 %v3428_v10, %v703_v59  ;;  %v804_v54 = vmul.f32 %v3431_v11, %v703_v59 }
  0xf5   : > { %v587_v51 = vmul.f32 %v3434_v12, %v468_v37  ;;  %v588_v52 = vmul.f32 %v3437_v13, %v468_v37  ;;  %v3005_v37 = vld [vmem:[%s4031_s5 + $0x24] ss:$8 sps:$4 sm:$0xff]  }
  0xf6   : > { %v998_v42 = vmax.f32 %v934_v38, 0.0  ;;  %v997_v44 = vmax.f32 %v933_v57, 0.0  ;;  %v594_v57 = vmul.f32 %v3437_v13, %v483_v30 }
  0xf8   : > { %v1044_v45 = vpack.c.bf16 %v998_v42, %v996_v41  ;;  %v1043_v1 = vpack.c.bf16 %v997_v44, %v995_v43 }
  0xf9   : > { %v691_v47 = vpop.permute.xlu1 %690 }
  0xfa   : > { %v797_v53 = vmul.f32 %v3428_v10, %v691_v47  ;;  %v798_v55 = vmul.f32 %v3431_v11, %v691_v47  ;;  %1375 = vmatprep.mubr.bf16.mxu1 %v1044_v45  ;;  %v3003_v45 = vld [vmem:[%s4031_s5 + $0x20] ss:$8 sps:$4 sm:$0xff]   ;;  %v3008_v47 = vld [vmem:[%s4031_s5 + $0x14] ss:$8 sps:$4 sm:$0xff]  }
  0xfb   : > { %1376 = vmatmul.mubr.bf16.vlgmr.msra.gmra.mxu1 %v1043_v1  ;;  %v867_v1 = vadd.f32 %v803_v35, %v593_v36 }
  0xfc   : > { %v861_v56 = vadd.f32 %v797_v53, %v587_v51  ;;  %v862_v58 = vadd.f32 %v798_v55, %v588_v52  ;;  %1757 = vmatpush1.bf16.msra.mxu1 %v2988_v46  ;;  %v868_v46 = vadd.f32 %v804_v54, %v594_v57  ;;  %v3006_v55 = vld [vmem:[%s4031_s5 + $0x10] ss:$8 sps:$4 sm:$0xff]  }
  0xfd   : > { %1758 = vmatprep.subr.bf16.mxu1 %v2993_v50 }
  0xfe   : > { %v937_v61 = vadd.f32 %v3447_v21, %v861_v56  ;;  %v938_v62 = vadd.f32 %v3451_v27, %v862_v58  ;;  %v473_v2 = vpop.permute.xlu1 %472  ;;  %v943_v56 = vadd.f32 %v3447_v21, %v867_v1  ;;  %v944_v58 = vadd.f32 %v3451_v27, %v868_v46 }
  0xff   : > { %v589_v17 = vmul.f32 %v3434_v12, %v473_v2  ;;  %v590_v19 = vmul.f32 %v3437_v13, %v473_v2 }
 0x100   : > { %v1002_v6 = vmax.f32 %v938_v62, 0.0  ;;  %v1001_v7 = vmax.f32 %v937_v61, 0.0  ;;  %1759 = vmatpush1.bf16.msra.mxu1 %v2991_v60  ;;  %v3011_v60 = vld [vmem:[%s4031_s5 + $0x4] ss:$8 sps:$4 sm:$0xff]   ;;  %v1008_v16 = vmax.f32 %v944_v58, 0.0 }
 0x101   : > { %1760 = vmatprep.subr.bf16.mxu1 %v2996_v0 }
 0x102   : > { %v1046_v14 = vpack.c.bf16 %v1002_v6, %v1000_v4  ;;  %v1045_v15 = vpack.c.bf16 %v1001_v7, %v999_v5  ;;  %v3009_v6 = vld [vmem:[%s4031_s5] ss:$8 sps:$4 sm:$0xff]   ;;  %v3014_v7 = vld [vmem:[%s4031_s5 + $0xf4] ss:$8 sps:$4 sm:$0xff]  }
 0x103   : > { %v695_v18 = vpop.permute.xlu1 %694 }
 0x104   : > { %v799_v20 = vmul.f32 %v3428_v10, %v695_v18  ;;  %v800_v22 = vmul.f32 %v3431_v11, %v695_v18  ;;  %1385 = vmatprep.mubr.bf16.mxu1 %v1046_v14  ;;  %1761 = vmatpush1.bf16.msra.mxu1 %v2994_v8 }
 0x105   : > { %1386 = vmatmul.mubr.bf16.gmra.mxu1 %v1045_v15  ;;  %1762 = vmatprep.subr.bf16.mxu1 %v2999_v9  ;;  %v498_v15 = vpop.permute.xlu0 %497 }
 0x106   : > { %v863_v25 = vadd.f32 %v799_v20, %v589_v17  ;;  %v864_v26 = vadd.f32 %v800_v22, %v590_v19  ;;  %v1007_v17 = vmax.f32 %v943_v56, 0.0  ;;  %v3012_v20 = vld [vmem:[%s4031_s5 + $0xf0] ss:$8 sps:$4 sm:$0xff]   ;;  %v3017_v22 = vld [vmem:[%s4031_s5 + $0xe4] ss:$8 sps:$4 sm:$0xff]   ;;  %v599_v36 = vmul.f32 %v3434_v12, %v498_v15 }
 0x107   : > { %v699_v31 = vpop.permute.xlu1 %698  ;;  %v600_v57 = vmul.f32 %v3437_v13, %v498_v15  ;;  %v3026_v56 = vld [vmem:[%s4031_s5 + $0xb4] ss:$8 sps:$4 sm:$0xff]  }
 0x108   : > { %v801_v32 = vmul.f32 %v3428_v10, %v699_v31  ;;  %v802_v33 = vmul.f32 %v3431_v11, %v699_v31  ;;  %1763 = vmatpush1.bf16.msra.mxu1 %v2997_v23  ;;  %v939_v38 = vadd.f32 %v3447_v21, %v863_v25  ;;  %v940_v39 = vadd.f32 %v3451_v27, %v864_v26 }
 0x109   : > { %1764 = vmatprep.subr.bf16.mxu1 %v3002_v24  ;;  %v719_v25 = vpop.permute.xlu0 %718 }
 0x10a   : > { %v865_v40 = vadd.f32 %v801_v32, %v591_v28  ;;  %v866_v41 = vadd.f32 %v802_v33, %v592_v29  ;;  %v1004_v48 = vmax.f32 %v940_v39, 0.0  ;;  %v1003_v50 = vmax.f32 %v939_v38, 0.0  ;;  %v3015_v32 = vld [vmem:[%s4031_s5 + $0xe0] ss:$8 sps:$4 sm:$0xff]   ;;  %v3020_v33 = vld [vmem:[%s4031_s5 + $0xd4] ss:$8 sps:$4 sm:$0xff]  }
 0x10c   : > { %v941_v42 = vadd.f32 %v3447_v21, %v865_v40  ;;  %v942_v43 = vadd.f32 %v3451_v27, %v866_v41  ;;  %v488_v44 = vpop.permute.xlu1 %487  ;;  %1765 = vmatpush1.bf16.msra.mxu1 %v3000_v34  ;;  %v3018_v40 = vld [vmem:[%s4031_s5 + $0xd0] ss:$8 sps:$4 sm:$0xff]   ;;  %v811_v41 = vmul.f32 %v3428_v10, %v719_v25 }
 0x10d   : > { %1766 = vmatprep.subr.bf16.mxu1 %v3005_v37  ;;  %v595_v0 = vmul.f32 %v3434_v12, %v488_v44  ;;  %v596_v61 = vmul.f32 %v3437_v13, %v488_v44  ;;  %v503_v39 = vpop.permute.xlu0 %502 }
 0x10e   : > { %v1006_v49 = vmax.f32 %v942_v43, 0.0  ;;  %v1005_v51 = vmax.f32 %v941_v42, 0.0  ;;  %v812_v42 = vmul.f32 %v3431_v11, %v719_v25  ;;  %v601_v43 = vmul.f32 %v3434_v12, %v503_v39 }
 0x10f   : > { %v602_v44 = vmul.f32 %v3437_v13, %v503_v39 }
 0x110   : > { %v1048_v52 = vpack.c.bf16 %v1006_v49, %v1004_v48  ;;  %v1047_v53 = vpack.c.bf16 %v1005_v51, %v1003_v50  ;;  %1767 = vmatpush1.bf16.msra.mxu1 %v3003_v45  ;;  %v3023_v45 = vld [vmem:[%s4031_s5 + $0xc4] ss:$8 sps:$4 sm:$0xff]  }
 0x111   : > { %v707_v59 = vpop.permute.xlu1 %706  ;;  %1768 = vmatprep.subr.bf16.mxu1 %v3008_v47 }
 0x112   : > { %v805_v62 = vmul.f32 %v3428_v10, %v707_v59  ;;  %v806_v2 = vmul.f32 %v3431_v11, %v707_v59  ;;  %1395 = vmatprep.mubr.bf16.mxu1 %v1048_v52  ;;  %v3021_v52 = vld [vmem:[%s4031_s5 + $0xc0] ss:$8 sps:$4 sm:$0xff]  }
 0x113   : > { %1396 = vmatmul.mubr.bf16.gmra.mxu1 %v1047_v53  ;;  %v875_v53 = vadd.f32 %v811_v41, %v601_v43 }
 0x114   : > { %v869_v4 = vadd.f32 %v805_v62, %v595_v0  ;;  %v870_v5 = vadd.f32 %v806_v2, %v596_v61  ;;  %1769 = vmatpush1.bf16.msra.mxu1 %v3006_v55  ;;  %v876_v55 = vadd.f32 %v812_v42, %v602_v44  ;;  %v3024_v2 = vld [vmem:[%s4031_s5 + $0xb0] ss:$8 sps:$4 sm:$0xff]  }
 0x115   : > { %1770 = vmatprep.subr.bf16.mxu1 %v3011_v60 }
 0x116   : > { %v945_v8 = vadd.f32 %v3447_v21, %v869_v4  ;;  %v946_v9 = vadd.f32 %v3451_v27, %v870_v5  ;;  %v493_v14 = vpop.permute.xlu1 %492  ;;  %v951_v4 = vadd.f32 %v3447_v21, %v875_v53  ;;  %v952_v5 = vadd.f32 %v3451_v27, %v876_v55 }
 0x117   : > { %v597_v26 = vmul.f32 %v3434_v12, %v493_v14  ;;  %v598_v29 = vmul.f32 %v3437_v13, %v493_v14 }
 0x118   : > { %v1010_v18 = vmax.f32 %v946_v9, 0.0  ;;  %v1009_v19 = vmax.f32 %v945_v8, 0.0  ;;  %1771 = vmatpush1.bf16.msra.mxu1 %v3009_v6  ;;  %v1016_v25 = vmax.f32 %v952_v5, 0.0 }
 0x119   : > { %1772 = vmatprep.subr.bf16.mxu1 %v3014_v7  ;;  %v3029_v7 = vld [vmem:[%s4031_s5 + $0xa4] ss:$8 sps:$4 sm:$0xff]  }
 0x11a   : > { %v1050_v23 = vpack.c.bf16 %v1010_v18, %v1008_v16  ;;  %v1049_v24 = vpack.c.bf16 %v1009_v19, %v1007_v17  ;;  %v3027_v18 = vld [vmem:[%s4031_s5 + $0xa0] ss:$8 sps:$4 sm:$0xff]   ;;  %v518_v19 = vpop.permute.xlu0 %517 }
 0x11b   : > { %v711_v28 = vpop.permute.xlu1 %710  ;;  %v607_v42 = vmul.f32 %v3434_v12, %v518_v19  ;;  %v608_v43 = vmul.f32 %v3437_v13, %v518_v19 }
 0x11c   : > { %v807_v30 = vmul.f32 %v3428_v10, %v711_v28  ;;  %v808_v31 = vmul.f32 %v3431_v11, %v711_v28  ;;  %1405 = vmatprep.mubr.bf16.mxu1 %v1050_v23  ;;  %1773 = vmatpush2.bf16.msra.mxu1 %v3012_v20  ;;  %v3032_v20 = vld [vmem:[%s4031_s5 + $0x94] ss:$8 sps:$4 sm:$0xff]  }
 0x11d   : > { %1406 = vmatmul.mubr.bf16.gmra.mxu1 %v1049_v24  ;;  %1774 = vmatprep.subr.bf16.mxu1 %v3017_v22 }
 0x11e   : > { %v871_v34 = vadd.f32 %v807_v30, %v597_v26  ;;  %v872_v35 = vadd.f32 %v808_v31, %v598_v29  ;;  %v1015_v26 = vmax.f32 %v951_v4, 0.0  ;;  %v3030_v30 = vld [vmem:[%s4031_s5 + $0x90] ss:$8 sps:$4 sm:$0xff]   ;;  %v3035_v31 = vld [vmem:[%s4031_s5 + $0x84] ss:$8 sps:$4 sm:$0xff]  }
 0x11f   : > { %v715_v54 = vpop.permute.xlu1 %714 }
 0x120   : > { %v809_v37 = vmul.f32 %v3428_v10, %v715_v54  ;;  %v810_v38 = vmul.f32 %v3431_v11, %v715_v54  ;;  %1775 = vmatpush2.bf16.msra.mxu1 %v3015_v32  ;;  %v947_v1 = vadd.f32 %v3447_v21, %v871_v34  ;;  %v948_v46 = vadd.f32 %v3451_v27, %v872_v35  ;;  %v523_v34 = vpop.permute.xlu0 %522 }
 0x121   : > { %1776 = vmatprep.subr.bf16.mxu1 %v3020_v33 }
 0x122   : > { %v873_v47 = vadd.f32 %v809_v37, %v599_v36  ;;  %v874_v48 = vadd.f32 %v810_v38, %v600_v57  ;;  %v1012_v58 = vmax.f32 %v948_v46, 0.0  ;;  %v1011_v60 = vmax.f32 %v947_v1, 0.0  ;;  %v3033_v38 = vld [vmem:[%s4031_s5 + $0x80] ss:$8 sps:$4 sm:$0xff]  }
 0x124   : > { %v949_v49 = vadd.f32 %v3447_v21, %v873_v47  ;;  %v950_v50 = vadd.f32 %v3451_v27, %v874_v48  ;;  %v508_v51 = vpop.permute.xlu1 %507  ;;  %1777 = vmatpush2.bf16.msra.mxu1 %v3018_v40  ;;  %v735_v1 = vpop.permute.xlu0 %734 }
 0x125   : > { %1778 = vmatprep.subr.bf16.mxu1 %v3023_v45  ;;  %v603_v8 = vmul.f32 %v3434_v12, %v508_v51  ;;  %v604_v9 = vmul.f32 %v3437_v13, %v508_v51  ;;  %v610_v51 = vmul.f32 %v3437_v13, %v523_v34  ;;  %v820_v53 = vmul.f32 %v3431_v11, %v735_v1 }
 0x126   : > { %v1014_v59 = vmax.f32 %v950_v50, 0.0  ;;  %v1013_v0 = vmax.f32 %v949_v49, 0.0  ;;  %v609_v50 = vmul.f32 %v3434_v12, %v523_v34 }
 0x128   : > { %v1052_v61 = vpack.c.bf16 %v1014_v59, %v1012_v58  ;;  %v1051_v62 = vpack.c.bf16 %v1013_v0, %v1011_v60  ;;  %1779 = vmatpush2.bf16.msra.mxu1 %v3021_v52  ;;  %v819_v52 = vmul.f32 %v3428_v10, %v735_v1 }
 0x129   : > { %v723_v6 = vpop.permute.xlu1 %722  ;;  %1780 = vmatprep.subr.bf16.mxu1 %v3026_v56 }
 0x12a   : > { %v813_v14 = vmul.f32 %v3428_v10, %v723_v6  ;;  %v814_v15 = vmul.f32 %v3431_v11, %v723_v6  ;;  %1415 = vmatprep.mubr.bf16.mxu1 %v1052_v61 }
 0x12b   : > { %1416 = vmatmul.mubr.bf16.gmra.mxu1 %v1051_v62  ;;  %v883_v62 = vadd.f32 %v819_v52, %v609_v50 }
 0x12c   : > { %v877_v16 = vadd.f32 %v813_v14, %v603_v8  ;;  %v878_v17 = vadd.f32 %v814_v15, %v604_v9  ;;  %1781 = vmatpush2.bf16.msra.mxu1 %v3024_v2  ;;  %v884_v2 = vadd.f32 %v820_v53, %v610_v51 }
 0x12d   : > { %1782 = vmatprep.subr.bf16.mxu1 %v3029_v7  ;;  %v959_v15 = vadd.f32 %v3447_v21, %v883_v62 }
 0x12e   : > { %v953_v22 = vadd.f32 %v3447_v21, %v877_v16  ;;  %v954_v23 = vadd.f32 %v3451_v27, %v878_v17  ;;  %v513_v24 = vpop.permute.xlu1 %512  ;;  %v960_v16 = vadd.f32 %v3451_v27, %v884_v2 }
 0x12f   : > { %v605_v35 = vmul.f32 %v3434_v12, %v513_v24  ;;  %v606_v36 = vmul.f32 %v3437_v13, %v513_v24 }
 0x130   : > { %v1018_v28 = vmax.f32 %v954_v23, 0.0  ;;  %v1017_v29 = vmax.f32 %v953_v22, 0.0  ;;  %1783 = vmatpush2.bf16.msra.mxu1 %v3027_v18  ;;  %v1023_v22 = vmax.f32 %v959_v15, 0.0 }
 0x131   : > { %1784 = vmatprep.subr.bf16.mxu1 %v3032_v20 }
 0x132   : > { %v1054_v32 = vpack.c.bf16 %v1018_v28, %v1016_v25  ;;  %v1053_v33 = vpack.c.bf16 %v1017_v29, %v1015_v26 }
 0x133   : > { %v727_v54 = vpop.permute.xlu1 %726 }
 0x134   : > { %v815_v57 = vmul.f32 %v3428_v10, %v727_v54  ;;  %v816_v37 = vmul.f32 %v3431_v11, %v727_v54  ;;  %1425 = vmatprep.mubr.bf16.mxu1 %v1054_v32  ;;  %1785 = vmatpush2.bf16.msra.mxu1 %v3030_v30 }
 0x135   : > { %1426 = vmatmul.mubr.bf16.gmra.mxu1 %v1053_v33  ;;  %1786 = vmatprep.subr.bf16.mxu1 %v3035_v31 }
 0x136   : > { %v879_v39 = vadd.f32 %v815_v57, %v605_v35  ;;  %v880_v40 = vadd.f32 %v816_v37, %v606_v36 }
 0x137   : > { %v731_v41 = vpop.permute.xlu1 %730 }
 0x138   : > { %v817_v44 = vmul.f32 %v3428_v10, %v731_v41  ;;  %v818_v45 = vmul.f32 %v3431_v11, %v731_v41  ;;  %1787 = vmatpush2.bf16.msra.mxu1 %v3033_v38  ;;  %v955_v46 = vadd.f32 %v3447_v21, %v879_v39  ;;  %v956_v47 = vadd.f32 %v3451_v27, %v880_v40 }
 0x13a   : > { %v881_v48 = vadd.f32 %v817_v44, %v607_v42  ;;  %v882_v49 = vadd.f32 %v818_v45, %v608_v43  ;;  %v1020_v59 = vmax.f32 %v956_v47, 0.0  ;;  %v1019_v0 = vmax.f32 %v955_v46, 0.0 }
 0x13c   : > { %v957_v55 = vadd.f32 %v3447_v21, %v881_v48  ;;  %v958_v56 = vadd.f32 %v3451_v27, %v882_v49  ;;  %v528_v58 = vpop.permute.xlu1 %527 }
 0x13d   : > { %v611_v7 = vmul.f32 %v3434_v12, %v528_v58  ;;  %v612_v8 = vmul.f32 %v3437_v13, %v528_v58  ;;  %v1024_v12 = vmax.f32 %v960_v16, 0.0 }
 0x13e   : > { %v1022_v60 = vmax.f32 %v958_v56, 0.0  ;;  %v1021_v61 = vmax.f32 %v957_v55, 0.0 }
 0x140   : > { %v1056_v4 = vpack.c.bf16 %v1022_v60, %v1020_v59  ;;  %v1055_v5 = vpack.c.bf16 %v1021_v61, %v1019_v0 }
 0x141   : > { %v739_v6 = vpop.permute.xlu1 %738 }
 0x142   : > { %v821_v9 = vmul.f32 %v3428_v10, %v739_v6  ;;  %v822_v14 = vmul.f32 %v3431_v11, %v739_v6  ;;  %1435 = vmatprep.mubr.bf16.mxu1 %v1056_v4  ;;  %v1091_v11 = vld [vmem:[%s4030_s4] sm:$0x3] }
 0x143   : > { %1436 = vmatmul.mubr.bf16.gmra.mxu1 %v1055_v5  ;;  %v3757_v26 = vrot.slane %v1091_v11, %v3416_v63 }
 0x144   : > { %v885_v17 = vadd.f32 %v821_v9, %v611_v7  ;;  %v886_v18 = vadd.f32 %v822_v14, %v612_v8 }
 0x146   : > { %v961_v19 = vadd.f32 %v3447_v21, %v885_v17  ;;  %v962_v20 = vadd.f32 %v3451_v27, %v886_v18  ;;  %v3760_v21 = vrot.slane %v1091_v11, %v3418_v3 }
 0x148   : > { %v1025_v23 = vmax.f32 %v961_v19, 0.0  ;;  %v1026_v13 = vmax.f32 %v962_v20, 0.0 }
 0x14a   : > { %v1058_v24 = vpack.c.bf16 %v1026_v13, %v1024_v12  ;;  %v1057_v10 = vpack.c.bf16 %v1025_v23, %v1023_v22 }
 0x14c   : > { %1445 = vmatprep.mubr.bf16.mxu1 %v1058_v24 }
 0x14d   : > { %1446 = vmatmul.mubr.bf16.gmra.mxu1 %v1057_v10 }
 0x15b   : > { %v1297_v25 = vpop.f32.mrf.mxu0 }
 0x15c   : > { %v1298_v31 = vadd.f32 %v1297_v25, %v3760_v21 }
 0x15d   : > { %v1299_v27 = vpop.f32.mrf.mxu0 }
 0x15e   : > { %v1300_v29 = vadd.f32 %v1299_v27, %v3757_v26  ;;  %v1456_v57 = vmax.f32 %v1298_v31, 0.0 }
 0x15f   : > { %v1301_v28 = vpop.f32.mrf.mxu0 }
 0x160   : > { %v1302_v30 = vadd.f32 %v1301_v28, %v3760_v21  ;;  %v1457_v35 = vmax.f32 %v1300_v29, 0.0 }
 0x161   : > { %v1303_v32 = vpop.f32.mrf.mxu0 }
 0x162   : > { %v1304_v33 = vadd.f32 %v1303_v32, %v3757_v26  ;;  %v1458_v34 = vmax.f32 %v1302_v30, 0.0 }
 0x164   : > { %v1459_v54 = vmax.f32 %v1304_v33, 0.0  ;;  %v1520_v39 = vpack.c.bf16 %v1458_v34, %v1456_v57 }
 0x165   : > { %v1307_v36 = vpop.f32.mrf.mxu0 }
 0x166   : > { %v1521_v37 = vpack.c.bf16 %v1459_v54, %v1457_v35  ;;  %v1308_v43 = vadd.f32 %v1307_v36, %v3760_v21  ;;  %v3036_v54 = vld [vmem:[%s4033_s7 + $0x78] sm:$0xff]  }
 0x167   : > { %v1309_v38 = vpop.f32.mrf.mxu0  ;;  %2745 = vmatprep.subr.bf16.mxu0 %v3036_v54 }
 0x168   : > { %1788 = vmatprep.mubr.bf16.mxu1 %v1521_v37  ;;  %v1310_v41 = vadd.f32 %v1309_v38, %v3757_v26  ;;  %v1460_v48 = vmax.f32 %v1308_v43, 0.0  ;;  %v3037_v37 = vld [vmem:[%s4033_s7 + $0x38] sm:$0xff]  }
 0x169   : > { %v1311_v40 = vpop.f32.mrf.mxu0  ;;  %1789 = vmatmul.mubr.bf16.vlgmr.msra.gmra.mxu1 %v1520_v39  ;;  %2746 = vmatpush3.bf16.msra.mxu0 %v3037_v37 }
 0x16a   : > { %v1312_v42 = vadd.f32 %v1311_v40, %v3760_v21  ;;  %v1461_v46 = vmax.f32 %v1310_v41, 0.0  ;;  %v3038_v41 = vld [vmem:[%s4033_s7 + $0x70] sm:$0xff]  }
 0x16b   : > { %v1313_v44 = vpop.f32.mrf.mxu0  ;;  %2747 = vmatprep.subr.bf16.mxu0 %v3038_v41 }
 0x16c   : > { %v1314_v45 = vadd.f32 %v1313_v44, %v3757_v26  ;;  %v1462_v1 = vmax.f32 %v1312_v42, 0.0  ;;  %v3039_v44 = vld [vmem:[%s4033_s7 + $0x30] sm:$0xff]  }
 0x16d   : > { %2748 = vmatpush3.bf16.msra.mxu0 %v3039_v44 }
 0x16e   : > { %v1463_v47 = vmax.f32 %v1314_v45, 0.0  ;;  %v1522_v50 = vpack.c.bf16 %v1462_v1, %v1460_v48  ;;  %v3040_v45 = vld [vmem:[%s4033_s7 + $0x68] sm:$0xff]  }
 0x16f   : > { %2749 = vmatprep.subr.bf16.mxu0 %v3040_v45 }
 0x170   : > { %v1523_v49 = vpack.c.bf16 %v1463_v47, %v1461_v46  ;;  %v3041_v47 = vld [vmem:[%s4033_s7 + $0x28] sm:$0xff]  }
 0x171   : > { %2750 = vmatpush3.bf16.msra.mxu0 %v3041_v47 }
 0x172   : > { %1798 = vmatprep.mubr.bf16.mxu1 %v1523_v49 }
 0x173   : > { %v1317_v51 = vpop.f32.mrf.mxu0  ;;  %1799 = vmatmul.mubr.bf16.gmra.mxu1 %v1522_v50  ;;  %v3042_v50 = vld [vmem:[%s4033_s7 + $0x60] sm:$0xff]  }
 0x174   : > { %v1318_v58 = vadd.f32 %v1317_v51, %v3760_v21  ;;  %2751 = vmatprep.subr.bf16.mxu0 %v3042_v50 }
 0x175   : > { %v1319_v52 = vpop.f32.mrf.mxu0 }
 0x176   : > { %v1320_v55 = vadd.f32 %v1319_v52, %v3757_v26  ;;  %v1464_v2 = vmax.f32 %v1318_v58, 0.0 }
 0x177   : > { %v1321_v53 = vpop.f32.mrf.mxu0 }
 0x178   : > { %v1322_v56 = vadd.f32 %v1321_v53, %v3760_v21  ;;  %v1465_v61 = vmax.f32 %v1320_v55, 0.0  ;;  %v3043_v55 = vld [vmem:[%s4033_s7 + $0x20] sm:$0xff]  }
 0x179   : > { %v1323_v59 = vpop.f32.mrf.mxu0  ;;  %2752 = vmatpush3.bf16.msra.mxu0 %v3043_v55 }
 0x17a   : > { %v1324_v60 = vadd.f32 %v1323_v59, %v3757_v26  ;;  %v1466_v0 = vmax.f32 %v1322_v56, 0.0  ;;  %v3044_v56 = vld [vmem:[%s4033_s7 + $0x58] sm:$0xff]  }
 0x17b   : > { %2753 = vmatprep.subr.bf16.mxu0 %v3044_v56 }
 0x17c   : > { %v1467_v62 = vmax.f32 %v1324_v60, 0.0  ;;  %v1524_v6 = vpack.c.bf16 %v1466_v0, %v1464_v2  ;;  %v3045_v60 = vld [vmem:[%s4033_s7 + $0x18] sm:$0xff]  }
 0x17d   : > { %v1327_v4 = vpop.f32.mrf.mxu0  ;;  %2754 = vmatpush3.bf16.msra.mxu0 %v3045_v60 }
 0x17e   : > { %v1525_v5 = vpack.c.bf16 %v1467_v62, %v1465_v61  ;;  %v1328_v15 = vadd.f32 %v1327_v4, %v3760_v21 }
 0x17f   : > { %v1329_v7 = vpop.f32.mrf.mxu0 }
 0x180   : > { %1808 = vmatprep.mubr.bf16.mxu1 %v1525_v5  ;;  %v1330_v9 = vadd.f32 %v1329_v7, %v3757_v26  ;;  %v1468_v22 = vmax.f32 %v1328_v15, 0.0 }
 0x181   : > { %v1331_v8 = vpop.f32.mrf.mxu0  ;;  %1809 = vmatmul.mubr.bf16.gmra.mxu1 %v1524_v6  ;;  %v3046_v6 = vld [vmem:[%s4033_s7 + $0x50] sm:$0xff]  }
 0x182   : > { %v1332_v14 = vadd.f32 %v1331_v8, %v3760_v21  ;;  %v1469_v19 = vmax.f32 %v1330_v9, 0.0  ;;  %v3047_v8 = vld [vmem:[%s4033_s7 + $0x10] sm:$0xff]   ;;  %2755 = vmatprep.subr.bf16.mxu0 %v3046_v6 }
 0x183   : > { %v1333_v16 = vpop.f32.mrf.mxu0  ;;  %2756 = vmatpush3.bf16.msra.mxu0 %v3047_v8 }
 0x184   : > { %v1334_v17 = vadd.f32 %v1333_v16, %v3757_v26  ;;  %v1470_v18 = vmax.f32 %v1332_v14, 0.0 }
 0x186   : > { %v1471_v20 = vmax.f32 %v1334_v17, 0.0  ;;  %v1526_v23 = vpack.c.bf16 %v1470_v18, %v1468_v22  ;;  %v3048_v18 = vld [vmem:[%s4033_s7 + $0x48] sm:$0xff]  }
 0x187   : > { %v3049_v22 = vld [vmem:[%s4033_s7 + $0x8] sm:$0xff]   ;;  %2757 = vmatprep.subr.bf16.mxu0 %v3048_v18 }
 0x188   : > { %v1527_v12 = vpack.c.bf16 %v1471_v20, %v1469_v19  ;;  %2758 = vmatpush3.bf16.msra.mxu0 %v3049_v22 }
 0x18a   : > { %1818 = vmatprep.mubr.bf16.mxu1 %v1527_v12 }
 0x18b   : > { %v1337_v13 = vpop.f32.mrf.mxu0  ;;  %1819 = vmatmul.mubr.bf16.gmra.mxu1 %v1526_v23 }
 0x18c   : > { %v1338_v27 = vadd.f32 %v1337_v13, %v3760_v21 }
 0x18d   : > { %v1339_v24 = vpop.f32.mrf.mxu0 }
 0x18e   : > { %v1340_v11 = vadd.f32 %v1339_v24, %v3757_v26  ;;  %v1472_v33 = vmax.f32 %v1338_v27, 0.0  ;;  %v3050_v24 = vld [vmem:[%s4033_s7 + $0x40] sm:$0xff]  }
 0x18f   : > { %v1341_v10 = vpop.f32.mrf.mxu0  ;;  %2759 = vmatprep.subr.bf16.mxu0 %v3050_v24 }
 0x190   : > { %v1342_v25 = vadd.f32 %v1341_v10, %v3760_v21  ;;  %v1473_v31 = vmax.f32 %v1340_v11, 0.0 }
 0x191   : > { %v1343_v28 = vpop.f32.mrf.mxu0 }
 0x192   : > { %v1344_v29 = vadd.f32 %v1343_v28, %v3757_v26  ;;  %v1474_v30 = vmax.f32 %v1342_v25, 0.0  ;;  %v3051_v25 = vld [vmem:[%s4033_s7] sm:$0xff]  }
 0x193   : > { %2760 = vmatpush3.bf16.msra.mxu0 %v3051_v25 }
 0x194   : > { %v1475_v32 = vmax.f32 %v1344_v29, 0.0  ;;  %v1528_v36 = vpack.c.bf16 %v1474_v30, %v1472_v33 }
 0x195   : > { %v1347_v34 = vpop.f32.mrf.mxu0 }
 0x196   : > { %v1529_v35 = vpack.c.bf16 %v1475_v32, %v1473_v31  ;;  %v1348_v42 = vadd.f32 %v1347_v34, %v3760_v21 }
 0x197   : > { %v1349_v57 = vpop.f32.mrf.mxu0 }
 0x198   : > { %1828 = vmatprep.mubr.bf16.mxu1 %v1529_v35  ;;  %v1350_v39 = vadd.f32 %v1349_v57, %v3757_v26  ;;  %v1476_v51 = vmax.f32 %v1348_v42, 0.0 }
 0x199   : > { %v1351_v38 = vpop.f32.mrf.mxu0  ;;  %1829 = vmatmul.mubr.bf16.gmra.mxu1 %v1528_v36 }
 0x19a   : > { %v1352_v40 = vadd.f32 %v1351_v38, %v3760_v21  ;;  %v1477_v48 = vmax.f32 %v1350_v39, 0.0 }
 0x19b   : > { %v1353_v43 = vpop.f32.mrf.mxu0 }
 0x19c   : > { %v1354_v1 = vadd.f32 %v1353_v43, %v3757_v26  ;;  %v1478_v46 = vmax.f32 %v1352_v40, 0.0 }
 0x19e   : > { %v1479_v49 = vmax.f32 %v1354_v1, 0.0  ;;  %v1530_v53 = vpack.c.bf16 %v1478_v46, %v1476_v51 }
 0x1a0   : > { %v1531_v52 = vpack.c.bf16 %v1479_v49, %v1477_v48 }
 0x1a2   : > { %1838 = vmatprep.mubr.bf16.mxu1 %v1531_v52 }
 0x1a3   : > { %v1357_v58 = vpop.f32.mrf.mxu0  ;;  %1839 = vmatmul.mubr.bf16.gmra.mxu1 %v1530_v53 }
 0x1a4   : > { %v1358_v2 = vadd.f32 %v1357_v58, %v3760_v21 }
 0x1a5   : > { %v1359_v59 = vpop.f32.mrf.mxu0 }
 0x1a6   : > { %v1360_v61 = vadd.f32 %v1359_v59, %v3757_v26  ;;  %v1480_v15 = vmax.f32 %v1358_v2, 0.0 }
 0x1a7   : > { %v1361_v0 = vpop.f32.mrf.mxu0 }
 0x1a8   : > { %v1362_v62 = vadd.f32 %v1361_v0, %v3760_v21  ;;  %v1481_v9 = vmax.f32 %v1360_v61, 0.0 }
 0x1a9   : > { %v1363_v4 = vpop.f32.mrf.mxu0 }
 0x1aa   : > { %v1364_v5 = vadd.f32 %v1363_v4, %v3757_v26  ;;  %v1482_v7 = vmax.f32 %v1362_v62, 0.0 }
 0x1ac   : > { %v1483_v14 = vmax.f32 %v1364_v5, 0.0  ;;  %v1532_v19 = vpack.c.bf16 %v1482_v7, %v1480_v15 }
 0x1ad   : > { %v1367_v16 = vpop.f32.mrf.mxu0 }
 0x1ae   : > { %v1533_v17 = vpack.c.bf16 %v1483_v14, %v1481_v9  ;;  %v1368_v10 = vadd.f32 %v1367_v16, %v3760_v21 }
 0x1af   : > { %v1369_v20 = vpop.f32.mrf.mxu0 }
 0x1b0   : > { %1848 = vmatprep.mubr.bf16.mxu1 %v1533_v17  ;;  %v1370_v23 = vadd.f32 %v1369_v20, %v3757_v26  ;;  %v1484_v31 = vmax.f32 %v1368_v10, 0.0 }
 0x1b1   : > { %v1371_v12 = vpop.f32.mrf.mxu0  ;;  %1849 = vmatmul.mubr.bf16.gmra.mxu1 %v1532_v19 }
 0x1b2   : > { %v1372_v13 = vadd.f32 %v1371_v12, %v3760_v21  ;;  %v1485_v29 = vmax.f32 %v1370_v23, 0.0 }
 0x1b3   : > { %v1373_v11 = vpop.f32.mrf.mxu0 }
 0x1b4   : > { %v1374_v27 = vadd.f32 %v1373_v11, %v3757_v26  ;;  %v1486_v28 = vmax.f32 %v1372_v13, 0.0 }
 0x1b6   : > { %v1487_v30 = vmax.f32 %v1374_v27, 0.0  ;;  %v1534_v33 = vpack.c.bf16 %v1486_v28, %v1484_v31 }
 0x1b8   : > { %v1535_v32 = vpack.c.bf16 %v1487_v30, %v1485_v29 }
 0x1ba   : > { %1858 = vmatprep.mubr.bf16.mxu1 %v1535_v32 }
 0x1bb   : > { %v1377_v34 = vpop.f32.mrf.mxu1  ;;  %1859 = vmatmul.mubr.bf16.gmra.mxu1 %v1534_v33 }
 0x1bc   : > { %v1378_v37 = vadd.f32 %v1377_v34, %v3760_v21 }
 0x1bd   : > { %v1379_v35 = vpop.f32.mrf.mxu1 }
 0x1be   : > { %v1380_v36 = vadd.f32 %v1379_v35, %v3757_v26  ;;  %v1488_v43 = vmax.f32 %v1378_v37, 0.0 }
 0x1bf   : > { %v1381_v54 = vpop.f32.mrf.mxu1 }
 0x1c0   : > { %v1382_v57 = vadd.f32 %v1381_v54, %v3760_v21  ;;  %v1489_v41 = vmax.f32 %v1380_v36, 0.0 }
 0x1c1   : > { %v1383_v38 = vpop.f32.mrf.mxu1 }
 0x1c2   : > { %v1384_v39 = vadd.f32 %v1383_v38, %v3757_v26  ;;  %v1490_v40 = vmax.f32 %v1382_v57, 0.0 }
 0x1c4   : > { %v1491_v42 = vmax.f32 %v1384_v39, 0.0  ;;  %v1536_v1 = vpack.c.bf16 %v1490_v40, %v1488_v43 }
 0x1c5   : > { %v1387_v44 = vpop.f32.mrf.mxu1 }
 0x1c6   : > { %v1537_v45 = vpack.c.bf16 %v1491_v42, %v1489_v41  ;;  %v1388_v50 = vadd.f32 %v1387_v44, %v3760_v21 }
 0x1c7   : > { %v1389_v46 = vpop.f32.mrf.mxu1 }
 0x1c8   : > { %1868 = vmatprep.mubr.bf16.mxu1 %v1537_v45  ;;  %v1390_v48 = vadd.f32 %v1389_v46, %v3757_v26  ;;  %v1492_v58 = vmax.f32 %v1388_v50, 0.0 }
 0x1c9   : > { %v1391_v47 = vpop.f32.mrf.mxu1  ;;  %1869 = vmatmul.mubr.bf16.gmra.mxu1 %v1536_v1 }
 0x1ca   : > { %v1392_v49 = vadd.f32 %v1391_v47, %v3760_v21  ;;  %v1493_v55 = vmax.f32 %v1390_v48, 0.0 }
 0x1cb   : > { %v1393_v51 = vpop.f32.mrf.mxu1 }
 0x1cc   : > { %v1394_v52 = vadd.f32 %v1393_v51, %v3757_v26  ;;  %v1494_v53 = vmax.f32 %v1392_v49, 0.0 }
 0x1ce   : > { %v1495_v56 = vmax.f32 %v1394_v52, 0.0  ;;  %v1538_v60 = vpack.c.bf16 %v1494_v53, %v1492_v58 }
 0x1d0   : > { %v1539_v59 = vpack.c.bf16 %v1495_v56, %v1493_v55 }
 0x1d2   : > { %1878 = vmatprep.mubr.bf16.mxu1 %v1539_v59 }
 0x1d3   : > { %v1397_v0 = vpop.f32.mrf.mxu1  ;;  %1879 = vmatmul.mubr.bf16.gmra.mxu1 %v1538_v60 }
 0x1d4   : > { %v1398_v5 = vadd.f32 %v1397_v0, %v3760_v21 }
 0x1d5   : > { %v1399_v61 = vpop.f32.mrf.mxu1 }
 0x1d6   : > { %v1400_v2 = vadd.f32 %v1399_v61, %v3757_v26  ;;  %v1496_v15 = vmax.f32 %v1398_v5, 0.0 }
 0x1d7   : > { %v1401_v62 = vpop.f32.mrf.mxu1 }
 0x1d8   : > { %v1402_v4 = vadd.f32 %v1401_v62, %v3760_v21  ;;  %v1497_v9 = vmax.f32 %v1400_v2, 0.0 }
 0x1d9   : > { %v1403_v6 = vpop.f32.mrf.mxu1 }
 0x1da   : > { %v1404_v7 = vadd.f32 %v1403_v6, %v3757_v26  ;;  %v1498_v8 = vmax.f32 %v1402_v4, 0.0 }
 0x1dc   : > { %v1499_v14 = vmax.f32 %v1404_v7, 0.0  ;;  %v1540_v18 = vpack.c.bf16 %v1498_v8, %v1496_v15 }
 0x1dd   : > { %v1407_v16 = vpop.f32.mrf.mxu1 }
 0x1de   : > { %v1541_v17 = vpack.c.bf16 %v1499_v14, %v1497_v9  ;;  %v1408_v23 = vadd.f32 %v1407_v16, %v3760_v21 }
 0x1df   : > { %v1409_v19 = vpop.f32.mrf.mxu1 }
 0x1e0   : > { %1888 = vmatprep.mubr.bf16.mxu1 %v1541_v17  ;;  %v1410_v22 = vadd.f32 %v1409_v19, %v3757_v26  ;;  %v1500_v27 = vmax.f32 %v1408_v23, 0.0 }
 0x1e1   : > { %v1411_v20 = vpop.f32.mrf.mxu1  ;;  %1889 = vmatmul.mubr.bf16.gmra.mxu1 %v1540_v18 }
 0x1e2   : > { %v1412_v12 = vadd.f32 %v1411_v20, %v3760_v21  ;;  %v1501_v11 = vmax.f32 %v1410_v22, 0.0 }
 0x1e3   : > { %v1413_v13 = vpop.f32.mrf.mxu1 }
 0x1e4   : > { %v1414_v24 = vadd.f32 %v1413_v13, %v3757_v26  ;;  %v1502_v10 = vmax.f32 %v1412_v12, 0.0 }
 0x1e6   : > { %v1503_v25 = vmax.f32 %v1414_v24, 0.0  ;;  %v1542_v29 = vpack.c.bf16 %v1502_v10, %v1500_v27 }
 0x1e8   : > { %v1543_v28 = vpack.c.bf16 %v1503_v25, %v1501_v11  ;;  %v1584_v25 = vld [vmem:[%s4032_s6] sm:$0x3] }
 0x1ea   : > { %1898 = vmatprep.mubr.bf16.mxu1 %v1543_v28  ;;  %v3878_v28 = vrot.slane %v1584_v25, %v3416_v63 }
 0x1eb   : > { %v1417_v30 = vpop.f32.mrf.mxu1  ;;  %1899 = vmatmul.mubr.bf16.gmra.mxu1 %v1542_v29 }
 0x1ec   : > { %v1418_v35 = vadd.f32 %v1417_v30, %v3760_v21 }
 0x1ed   : > { %v1419_v31 = vpop.f32.mrf.mxu1 }
 0x1ee   : > { %v1420_v33 = vadd.f32 %v1419_v31, %v3757_v26  ;;  %v1504_v39 = vmax.f32 %v1418_v35, 0.0 }
 0x1ef   : > { %v1421_v32 = vpop.f32.mrf.mxu1 }
 0x1f0   : > { %v1422_v34 = vadd.f32 %v1421_v32, %v3760_v21  ;;  %v1505_v37 = vmax.f32 %v1420_v33, 0.0 }
 0x1f1   : > { %v1423_v54 = vpop.f32.mrf.mxu1 }
 0x1f2   : > { %v1424_v36 = vadd.f32 %v1423_v54, %v3757_v26  ;;  %v1506_v57 = vmax.f32 %v1422_v34, 0.0 }
 0x1f4   : > { %v1507_v38 = vmax.f32 %v1424_v36, 0.0  ;;  %v1544_v42 = vpack.c.bf16 %v1506_v57, %v1504_v39 }
 0x1f5   : > { %v1427_v40 = vpop.f32.mrf.mxu1 }
 0x1f6   : > { %v1545_v41 = vpack.c.bf16 %v1507_v38, %v1505_v37  ;;  %v1428_v46 = vadd.f32 %v1427_v40, %v3760_v21 }
 0x1f7   : > { %v1429_v43 = vpop.f32.mrf.mxu1 }
 0x1f8   : > { %1908 = vmatprep.mubr.bf16.mxu1 %v1545_v41  ;;  %v1430_v45 = vadd.f32 %v1429_v43, %v3757_v26  ;;  %v1508_v52 = vmax.f32 %v1428_v46, 0.0 }
 0x1f9   : > { %v1431_v44 = vpop.f32.mrf.mxu1  ;;  %1909 = vmatmul.mubr.bf16.gmra.mxu1 %v1544_v42 }
 0x1fa   : > { %v1432_v1 = vadd.f32 %v1431_v44, %v3760_v21  ;;  %v1509_v50 = vmax.f32 %v1430_v45, 0.0 }
 0x1fb   : > { %v1433_v47 = vpop.f32.mrf.mxu1 }
 0x1fc   : > { %v1434_v48 = vadd.f32 %v1433_v47, %v3757_v26  ;;  %v1510_v49 = vmax.f32 %v1432_v1, 0.0 }
 0x1fe   : > { %v1511_v51 = vmax.f32 %v1434_v48, 0.0  ;;  %v1546_v55 = vpack.c.bf16 %v1510_v49, %v1508_v52 }
 0x200   : > { %v1547_v53 = vpack.c.bf16 %v1511_v51, %v1509_v50 }
 0x202   : > { %1918 = vmatprep.mubr.bf16.mxu1 %v1547_v53 }
 0x203   : > { %v1437_v56 = vpop.f32.mrf.mxu1  ;;  %1919 = vmatmul.mubr.bf16.gmra.mxu1 %v1546_v55 }
 0x204   : > { %v1438_v61 = vadd.f32 %v1437_v56, %v3760_v21 }
 0x205   : > { %v1439_v58 = vpop.f32.mrf.mxu1 }
 0x206   : > { %v1440_v60 = vadd.f32 %v1439_v58, %v3757_v26  ;;  %v1512_v7 = vmax.f32 %v1438_v61, 0.0 }
 0x207   : > { %v1441_v59 = vpop.f32.mrf.mxu1 }
 0x208   : > { %v1442_v0 = vadd.f32 %v1441_v59, %v3760_v21  ;;  %v1513_v5 = vmax.f32 %v1440_v60, 0.0 }
 0x209   : > { %v1443_v62 = vpop.f32.mrf.mxu1 }
 0x20a   : > { %v1444_v2 = vadd.f32 %v1443_v62, %v3757_v26  ;;  %v1514_v4 = vmax.f32 %v1442_v0, 0.0 }
 0x20c   : > { %v1515_v6 = vmax.f32 %v1444_v2, 0.0  ;;  %v1548_v14 = vpack.c.bf16 %v1514_v4, %v1512_v7 }
 0x20d   : > { %v1447_v8 = vpop.f32.mrf.mxu1 }
 0x20e   : > { %v1549_v9 = vpack.c.bf16 %v1515_v6, %v1513_v5  ;;  %v1448_v19 = vadd.f32 %v1447_v8, %v3760_v21 }
 0x20f   : > { %v1449_v15 = vpop.f32.mrf.mxu1 }
 0x210   : > { %1928 = vmatprep.mubr.bf16.mxu1 %v1549_v9  ;;  %v1450_v17 = vadd.f32 %v1449_v15, %v3757_v26  ;;  %v1516_v24 = vmax.f32 %v1448_v19, 0.0 }
 0x211   : > { %v1451_v16 = vpop.f32.mrf.mxu1  ;;  %1929 = vmatmul.mubr.bf16.gmra.mxu1 %v1548_v14 }
 0x212   : > { %v1452_v18 = vadd.f32 %v1451_v16, %v3760_v21  ;;  %v1517_v23 = vmax.f32 %v1450_v17, 0.0  ;;  %v3881_v21 = vrot.slane %v1584_v25, %v3418_v3 }
 0x213   : > { %v1453_v20 = vpop.f32.mrf.mxu1 }
 0x214   : > { %v1454_v22 = vadd.f32 %v1453_v20, %v3757_v26  ;;  %v1518_v12 = vmax.f32 %v1452_v18, 0.0 }
 0x216   : > { %v1519_v13 = vmax.f32 %v1454_v22, 0.0  ;;  %v1550_v11 = vpack.c.bf16 %v1518_v12, %v1516_v24 }
 0x218   : > { %v1551_v10 = vpack.c.bf16 %v1519_v13, %v1517_v23 }
 0x21a   : > { %1938 = vmatprep.mubr.bf16.mxu1 %v1551_v10 }
 0x21b   : > { %1939 = vmatmul.mubr.bf16.gmra.mxu1 %v1550_v11 }
 0x229   : > { %v1790_v27 = vpop.f32.mrf.mxu1 }
 0x22a   : > { %v1791_v32 = vadd.f32 %v1790_v27, %v3881_v21 }
 0x22b   : > { %v1792_v26 = vpop.f32.mrf.mxu1 }
 0x22c   : > { %v1793_v30 = vadd.f32 %v1792_v26, %v3878_v28  ;;  %v1949_v63 = vmax.f32 %v1791_v32, 0.0 }
 0x22d   : > { %v1794_v29 = vpop.f32.mrf.mxu1 }
 0x22e   : > { %v1795_v31 = vadd.f32 %v1794_v29, %v3881_v21  ;;  %v1950_v54 = vmax.f32 %v1793_v30, 0.0 }
 0x22f   : > { %v1796_v33 = vpop.f32.mrf.mxu1 }
 0x230   : > { %v1797_v34 = vadd.f32 %v1796_v33, %v3878_v28  ;;  %v1951_v35 = vmax.f32 %v1795_v31, 0.0 }
 0x232   : > { %v1952_v36 = vmax.f32 %v1797_v34, 0.0  ;;  %v2013_v3 = vpack.c.bf16 %v1951_v35, %v1949_v63 }
 0x233   : > { %v1800_v57 = vpop.f32.mrf.mxu1 }
 0x234   : > { %v2014_v37 = vpack.c.bf16 %v1952_v36, %v1950_v54  ;;  %v1801_v42 = vadd.f32 %v1800_v57, %v3881_v21 }
 0x235   : > { %v1802_v38 = vpop.f32.mrf.mxu1 }
 0x236   : > { %2212 = vmatprep.mubr.bf16.mxu0 %v2014_v37  ;;  %v1803_v40 = vadd.f32 %v1802_v38, %v3878_v28  ;;  %v1953_v47 = vmax.f32 %v1801_v42, 0.0 }
 0x237   : > { %v1804_v39 = vpop.f32.mrf.mxu1  ;;  %2213 = vmatmul.mubr.bf16.vlgmr.msra.gmra.mxu0 %v2013_v3 }
 0x238   : > { %v1805_v41 = vadd.f32 %v1804_v39, %v3881_v21  ;;  %v1954_v1 = vmax.f32 %v1803_v40, 0.0 }
 0x239   : > { %v1806_v43 = vpop.f32.mrf.mxu1 }
 0x23a   : > { %v1807_v44 = vadd.f32 %v1806_v43, %v3878_v28  ;;  %v1955_v45 = vmax.f32 %v1805_v41, 0.0 }
 0x23c   : > { %v1956_v46 = vmax.f32 %v1807_v44, 0.0  ;;  %v2015_v49 = vpack.c.bf16 %v1955_v45, %v1953_v47 }
 0x23e   : > { %v2016_v48 = vpack.c.bf16 %v1956_v46, %v1954_v1 }
 0x240   : > { %2220 = vmatprep.mubr.bf16.mxu0 %v2016_v48 }
 0x241   : > { %v1810_v50 = vpop.f32.mrf.mxu1  ;;  %2221 = vmatmul.mubr.bf16.gmra.mxu0 %v2015_v49 }
 0x242   : > { %v1811_v56 = vadd.f32 %v1810_v50, %v3881_v21 }
 0x243   : > { %v1812_v51 = vpop.f32.mrf.mxu1 }
 0x244   : > { %v1813_v53 = vadd.f32 %v1812_v51, %v3878_v28  ;;  %v1957_v62 = vmax.f32 %v1811_v56, 0.0 }
 0x245   : > { %v1814_v52 = vpop.f32.mrf.mxu1 }
 0x246   : > { %v1815_v55 = vadd.f32 %v1814_v52, %v3881_v21  ;;  %v1958_v0 = vmax.f32 %v1813_v53, 0.0 }
 0x247   : > { %v1816_v58 = vpop.f32.mrf.mxu1 }
 0x248   : > { %v1817_v59 = vadd.f32 %v1816_v58, %v3878_v28  ;;  %v1959_v60 = vmax.f32 %v1815_v55, 0.0 }
 0x24a   : > { %v1960_v61 = vmax.f32 %v1817_v59, 0.0  ;;  %v2017_v5 = vpack.c.bf16 %v1959_v60, %v1957_v62 }
 0x24b   : > { %v1820_v2 = vpop.f32.mrf.mxu1 }
 0x24c   : > { %v2018_v4 = vpack.c.bf16 %v1960_v61, %v1958_v0  ;;  %v1821_v14 = vadd.f32 %v1820_v2, %v3881_v21 }
 0x24d   : > { %v1822_v6 = vpop.f32.mrf.mxu1 }
 0x24e   : > { %2228 = vmatprep.mubr.bf16.mxu0 %v2018_v4  ;;  %v1823_v8 = vadd.f32 %v1822_v6, %v3878_v28  ;;  %v1961_v20 = vmax.f32 %v1821_v14, 0.0 }
 0x24f   : > { %v1824_v7 = vpop.f32.mrf.mxu1  ;;  %2229 = vmatmul.mubr.bf16.gmra.mxu0 %v2017_v5 }
 0x250   : > { %v1825_v9 = vadd.f32 %v1824_v7, %v3881_v21  ;;  %v1962_v18 = vmax.f32 %v1823_v8, 0.0 }
 0x251   : > { %v1826_v15 = vpop.f32.mrf.mxu1 }
 0x252   : > { %v1827_v16 = vadd.f32 %v1826_v15, %v3878_v28  ;;  %v1963_v17 = vmax.f32 %v1825_v9, 0.0 }
 0x254   : > { %v1964_v19 = vmax.f32 %v1827_v16, 0.0  ;;  %v2019_v12 = vpack.c.bf16 %v1963_v17, %v1961_v20 }
 0x256   : > { %v2020_v22 = vpack.c.bf16 %v1964_v19, %v1962_v18 }
 0x258   : > { %2236 = vmatprep.mubr.bf16.mxu0 %v2020_v22 }
 0x259   : > { %v1830_v23 = vpop.f32.mrf.mxu1  ;;  %2237 = vmatmul.mubr.bf16.gmra.mxu0 %v2019_v12 }
 0x25a   : > { %v1831_v25 = vadd.f32 %v1830_v23, %v3881_v21 }
 0x25b   : > { %v1832_v13 = vpop.f32.mrf.mxu1 }
 0x25c   : > { %v1833_v10 = vadd.f32 %v1832_v13, %v3878_v28  ;;  %v1965_v32 = vmax.f32 %v1831_v25, 0.0 }
 0x25d   : > { %v1834_v24 = vpop.f32.mrf.mxu1 }
 0x25e   : > { %v1835_v11 = vadd.f32 %v1834_v24, %v3881_v21  ;;  %v1966_v30 = vmax.f32 %v1833_v10, 0.0 }
 0x25f   : > { %v1836_v27 = vpop.f32.mrf.mxu1 }
 0x260   : > { %v1837_v26 = vadd.f32 %v1836_v27, %v3878_v28  ;;  %v1967_v29 = vmax.f32 %v1835_v11, 0.0 }
 0x262   : > { %v1968_v31 = vmax.f32 %v1837_v26, 0.0  ;;  %v2021_v35 = vpack.c.bf16 %v1967_v29, %v1965_v32 }
 0x263   : > { %v1840_v33 = vpop.f32.mrf.mxu1 }
 0x264   : > { %v2022_v34 = vpack.c.bf16 %v1968_v31, %v1966_v30  ;;  %v1841_v37 = vadd.f32 %v1840_v33, %v3881_v21 }
 0x265   : > { %v1842_v54 = vpop.f32.mrf.mxu1 }
 0x266   : > { %2244 = vmatprep.mubr.bf16.mxu0 %v2022_v34  ;;  %v1843_v57 = vadd.f32 %v1842_v54, %v3878_v28  ;;  %v1969_v42 = vmax.f32 %v1841_v37, 0.0 }
 0x267   : > { %v1844_v36 = vpop.f32.mrf.mxu1  ;;  %2245 = vmatmul.mubr.bf16.gmra.mxu0 %v2021_v35 }
 0x268   : > { %v1845_v63 = vadd.f32 %v1844_v36, %v3881_v21  ;;  %v1970_v40 = vmax.f32 %v1843_v57, 0.0 }
 0x269   : > { %v1846_v38 = vpop.f32.mrf.mxu1 }
 0x26a   : > { %v1847_v3 = vadd.f32 %v1846_v38, %v3878_v28  ;;  %v1971_v39 = vmax.f32 %v1845_v63, 0.0 }
 0x26c   : > { %v1972_v41 = vmax.f32 %v1847_v3, 0.0  ;;  %v2023_v44 = vpack.c.bf16 %v1971_v39, %v1969_v42 }
 0x26e   : > { %v2024_v43 = vpack.c.bf16 %v1972_v41, %v1970_v40 }
 0x270   : > { %2252 = vmatprep.mubr.bf16.mxu0 %v2024_v43 }
 0x271   : > { %v1850_v45 = vpop.f32.mrf.mxu1  ;;  %2253 = vmatmul.mubr.bf16.gmra.mxu0 %v2023_v44 }
 0x272   : > { %v1851_v49 = vadd.f32 %v1850_v45, %v3881_v21 }
 0x273   : > { %v1852_v1 = vpop.f32.mrf.mxu1 }
 0x274   : > { %v1853_v47 = vadd.f32 %v1852_v1, %v3878_v28  ;;  %v1973_v56 = vmax.f32 %v1851_v49, 0.0 }
 0x275   : > { %v1854_v46 = vpop.f32.mrf.mxu1 }
 0x276   : > { %v1855_v48 = vadd.f32 %v1854_v46, %v3881_v21  ;;  %v1974_v53 = vmax.f32 %v1853_v47, 0.0 }
 0x277   : > { %v1856_v50 = vpop.f32.mrf.mxu1 }
 0x278   : > { %v1857_v51 = vadd.f32 %v1856_v50, %v3878_v28  ;;  %v1975_v52 = vmax.f32 %v1855_v48, 0.0 }
 0x27a   : > { %v1976_v55 = vmax.f32 %v1857_v51, 0.0  ;;  %v2025_v60 = vpack.c.bf16 %v1975_v52, %v1973_v56 }
 0x27b   : > { %v1860_v58 = vpop.f32.mrf.mxu1 }
 0x27c   : > { %v2026_v59 = vpack.c.bf16 %v1976_v55, %v1974_v53  ;;  %v1861_v4 = vadd.f32 %v1860_v58, %v3881_v21 }
 0x27d   : > { %v1862_v0 = vpop.f32.mrf.mxu1 }
 0x27e   : > { %2260 = vmatprep.mubr.bf16.mxu0 %v2026_v59  ;;  %v1863_v62 = vadd.f32 %v1862_v0, %v3878_v28  ;;  %v1977_v14 = vmax.f32 %v1861_v4, 0.0 }
 0x27f   : > { %v1864_v61 = vpop.f32.mrf.mxu1  ;;  %2261 = vmatmul.mubr.bf16.gmra.mxu0 %v2025_v60 }
 0x280   : > { %v1865_v2 = vadd.f32 %v1864_v61, %v3881_v21  ;;  %v1978_v8 = vmax.f32 %v1863_v62, 0.0 }
 0x281   : > { %v1866_v5 = vpop.f32.mrf.mxu1 }
 0x282   : > { %v1867_v6 = vadd.f32 %v1866_v5, %v3878_v28  ;;  %v1979_v7 = vmax.f32 %v1865_v2, 0.0 }
 0x284   : > { %v1980_v9 = vmax.f32 %v1867_v6, 0.0  ;;  %v2027_v16 = vpack.c.bf16 %v1979_v7, %v1977_v14 }
 0x286   : > { %v2028_v15 = vpack.c.bf16 %v1980_v9, %v1978_v8 }
 0x288   : > { %2268 = vmatprep.mubr.bf16.mxu0 %v2028_v15 }
 0x289   : > { %v1870_v17 = vpop.f32.mrf.mxu1  ;;  %2269 = vmatmul.mubr.bf16.gmra.mxu0 %v2027_v16 }
 0x28a   : > { %v1871_v12 = vadd.f32 %v1870_v17, %v3881_v21 }
 0x28b   : > { %v1872_v18 = vpop.f32.mrf.mxu1 }
 0x28c   : > { %v1873_v20 = vadd.f32 %v1872_v18, %v3878_v28  ;;  %v1981_v25 = vmax.f32 %v1871_v12, 0.0 }
 0x28d   : > { %v1874_v19 = vpop.f32.mrf.mxu1 }
 0x28e   : > { %v1875_v22 = vadd.f32 %v1874_v19, %v3881_v21  ;;  %v1982_v10 = vmax.f32 %v1873_v20, 0.0 }
 0x28f   : > { %v1876_v23 = vpop.f32.mrf.mxu1 }
 0x290   : > { %v1877_v13 = vadd.f32 %v1876_v23, %v3878_v28  ;;  %v1983_v24 = vmax.f32 %v1875_v22, 0.0 }
 0x292   : > { %v1984_v11 = vmax.f32 %v1877_v13, 0.0  ;;  %v2029_v29 = vpack.c.bf16 %v1983_v24, %v1981_v25 }
 0x293   : > { %v1880_v27 = vpop.f32.mrf.mxu1 }
 0x294   : > { %v2030_v26 = vpack.c.bf16 %v1984_v11, %v1982_v10  ;;  %v1881_v34 = vadd.f32 %v1880_v27, %v3881_v21 }
 0x295   : > { %v1882_v30 = vpop.f32.mrf.mxu1 }
 0x296   : > { %2276 = vmatprep.mubr.bf16.mxu0 %v2030_v26  ;;  %v1883_v32 = vadd.f32 %v1882_v30, %v3878_v28  ;;  %v1985_v37 = vmax.f32 %v1881_v34, 0.0 }
 0x297   : > { %v1884_v31 = vpop.f32.mrf.mxu1  ;;  %2277 = vmatmul.mubr.bf16.gmra.mxu0 %v2029_v29 }
 0x298   : > { %v1885_v33 = vadd.f32 %v1884_v31, %v3881_v21  ;;  %v1986_v57 = vmax.f32 %v1883_v32, 0.0 }
 0x299   : > { %v1886_v35 = vpop.f32.mrf.mxu1 }
 0x29a   : > { %v1887_v54 = vadd.f32 %v1886_v35, %v3878_v28  ;;  %v1987_v36 = vmax.f32 %v1885_v33, 0.0 }
 0x29c   : > { %v1988_v63 = vmax.f32 %v1887_v54, 0.0  ;;  %v2031_v3 = vpack.c.bf16 %v1987_v36, %v1985_v37 }
 0x29e   : > { %v2032_v38 = vpack.c.bf16 %v1988_v63, %v1986_v57 }
 0x2a0   : > { %2284 = vmatprep.mubr.bf16.mxu0 %v2032_v38 }
 0x2a1   : > { %v1890_v39 = vpop.f32.mrf.mxu1  ;;  %2285 = vmatmul.mubr.bf16.gmra.mxu0 %v2031_v3 }
 0x2a2   : > { %v1891_v44 = vadd.f32 %v1890_v39, %v3881_v21 }
 0x2a3   : > { %v1892_v40 = vpop.f32.mrf.mxu1 }
 0x2a4   : > { %v1893_v42 = vadd.f32 %v1892_v40, %v3878_v28  ;;  %v1989_v49 = vmax.f32 %v1891_v44, 0.0 }
 0x2a5   : > { %v1894_v41 = vpop.f32.mrf.mxu1 }
 0x2a6   : > { %v1895_v43 = vadd.f32 %v1894_v41, %v3881_v21  ;;  %v1990_v47 = vmax.f32 %v1893_v42, 0.0 }
 0x2a7   : > { %v1896_v45 = vpop.f32.mrf.mxu1 }
 0x2a8   : > { %v1897_v1 = vadd.f32 %v1896_v45, %v3878_v28  ;;  %v1991_v46 = vmax.f32 %v1895_v43, 0.0 }
 0x2aa   : > { %v1992_v48 = vmax.f32 %v1897_v1, 0.0  ;;  %v2033_v52 = vpack.c.bf16 %v1991_v46, %v1989_v49 }
 0x2ab   : > { %v1900_v50 = vpop.f32.mrf.mxu1 }
 0x2ac   : > { %v2034_v51 = vpack.c.bf16 %v1992_v48, %v1990_v47  ;;  %v1901_v59 = vadd.f32 %v1900_v50, %v3881_v21 }
 0x2ad   : > { %v1902_v53 = vpop.f32.mrf.mxu1 }
 0x2ae   : > { %2292 = vmatprep.mubr.bf16.mxu0 %v2034_v51  ;;  %v1903_v56 = vadd.f32 %v1902_v53, %v3878_v28  ;;  %v1993_v4 = vmax.f32 %v1901_v59, 0.0 }
 0x2af   : > { %v1904_v55 = vpop.f32.mrf.mxu1  ;;  %2293 = vmatmul.mubr.bf16.gmra.mxu0 %v2033_v52 }
 0x2b0   : > { %v1905_v58 = vadd.f32 %v1904_v55, %v3881_v21  ;;  %v1994_v62 = vmax.f32 %v1903_v56, 0.0 }
 0x2b1   : > { %v1906_v60 = vpop.f32.mrf.mxu1 }
 0x2b2   : > { %v1907_v0 = vadd.f32 %v1906_v60, %v3878_v28  ;;  %v1995_v61 = vmax.f32 %v1905_v58, 0.0 }
 0x2b4   : > { %v1996_v2 = vmax.f32 %v1907_v0, 0.0  ;;  %v2035_v6 = vpack.c.bf16 %v1995_v61, %v1993_v4 }
 0x2b6   : > { %v2036_v5 = vpack.c.bf16 %v1996_v2, %v1994_v62  ;;  %v3950_v62 = vld [vmem:[%s4034_s8] ss:$0 sm:$0xff] }
 0x2b8   : > { %2300 = vmatprep.mubr.bf16.mxu0 %v2036_v5 }
 0x2b9   : > { %v1910_v7 = vpop.f32.mrf.mxu1  ;;  %2301 = vmatmul.mubr.bf16.gmra.mxu0 %v2035_v6 }
 0x2ba   : > { %v1911_v16 = vadd.f32 %v1910_v7, %v3881_v21 }
 0x2bb   : > { %v1912_v8 = vpop.f32.mrf.mxu1 }
 0x2bc   : > { %v1913_v14 = vadd.f32 %v1912_v8, %v3878_v28  ;;  %v1997_v12 = vmax.f32 %v1911_v16, 0.0 }
 0x2bd   : > { %v1914_v9 = vpop.f32.mrf.mxu1 }
 0x2be   : > { %v1915_v15 = vadd.f32 %v1914_v9, %v3881_v21  ;;  %v1998_v20 = vmax.f32 %v1913_v14, 0.0 }
 0x2bf   : > { %v1916_v17 = vpop.f32.mrf.mxu1 }
 0x2c0   : > { %v1917_v18 = vadd.f32 %v1916_v17, %v3878_v28  ;;  %v1999_v19 = vmax.f32 %v1915_v15, 0.0 }
 0x2c2   : > { %v2000_v22 = vmax.f32 %v1917_v18, 0.0  ;;  %v2037_v24 = vpack.c.bf16 %v1999_v19, %v1997_v12 }
 0x2c3   : > { %v1920_v23 = vpop.f32.mrf.mxu1 }
 0x2c4   : > { %v2038_v13 = vpack.c.bf16 %v2000_v22, %v1998_v20  ;;  %v1921_v26 = vadd.f32 %v1920_v23, %v3881_v21 }
 0x2c5   : > { %v1922_v10 = vpop.f32.mrf.mxu1 }
 0x2c6   : > { %2308 = vmatprep.mubr.bf16.mxu0 %v2038_v13  ;;  %v1923_v25 = vadd.f32 %v1922_v10, %v3878_v28  ;;  %v2001_v34 = vmax.f32 %v1921_v26, 0.0 }
 0x2c7   : > { %v1924_v11 = vpop.f32.mrf.mxu1  ;;  %2309 = vmatmul.mubr.bf16.gmra.mxu0 %v2037_v24 }
 0x2c8   : > { %v1925_v27 = vadd.f32 %v1924_v11, %v3881_v21  ;;  %v2002_v32 = vmax.f32 %v1923_v25, 0.0 }
 0x2c9   : > { %v1926_v29 = vpop.f32.mrf.mxu1 }
 0x2ca   : > { %v1927_v30 = vadd.f32 %v1926_v29, %v3878_v28  ;;  %v2003_v31 = vmax.f32 %v1925_v27, 0.0 }
 0x2cc   : > { %v2004_v33 = vmax.f32 %v1927_v30, 0.0  ;;  %v2039_v54 = vpack.c.bf16 %v2003_v31, %v2001_v34 }
 0x2ce   : > { %v2040_v35 = vpack.c.bf16 %v2004_v33, %v2002_v32 }
 0x2d0   : > { %2316 = vmatprep.mubr.bf16.mxu0 %v2040_v35 }
 0x2d1   : > { %v1930_v36 = vpop.f32.mrf.mxu1  ;;  %2317 = vmatmul.mubr.bf16.gmra.mxu0 %v2039_v54 }
 0x2d2   : > { %v1931_v3 = vadd.f32 %v1930_v36, %v3881_v21 }
 0x2d3   : > { %v1932_v57 = vpop.f32.mrf.mxu1 }
 0x2d4   : > { %v1933_v37 = vadd.f32 %v1932_v57, %v3878_v28  ;;  %v2005_v44 = vmax.f32 %v1931_v3, 0.0 }
 0x2d5   : > { %v1934_v63 = vpop.f32.mrf.mxu1 }
 0x2d6   : > { %v1935_v38 = vadd.f32 %v1934_v63, %v3881_v21  ;;  %v2006_v42 = vmax.f32 %v1933_v37, 0.0 }
 0x2d7   : > { %v1936_v39 = vpop.f32.mrf.mxu1 }
 0x2d8   : > { %v1937_v40 = vadd.f32 %v1936_v39, %v3878_v28  ;;  %v2007_v41 = vmax.f32 %v1935_v38, 0.0 }
 0x2da   : > { %v2008_v43 = vmax.f32 %v1937_v40, 0.0  ;;  %v2041_v46 = vpack.c.bf16 %v2007_v41, %v2005_v44 }
 0x2db   : > { %v1940_v45 = vpop.f32.mrf.mxu1 }
 0x2dc   : > { %v2042_v1 = vpack.c.bf16 %v2008_v43, %v2006_v42  ;;  %v1941_v51 = vadd.f32 %v1940_v45, %v3881_v21 }
 0x2dd   : > { %v1942_v47 = vpop.f32.mrf.mxu1 }
 0x2de   : > { %2324 = vmatprep.mubr.bf16.mxu0 %v2042_v1  ;;  %v1943_v49 = vadd.f32 %v1942_v47, %v3878_v28  ;;  %v2009_v59 = vmax.f32 %v1941_v51, 0.0 }
 0x2df   : > { %v1944_v48 = vpop.f32.mrf.mxu1  ;;  %2325 = vmatmul.mubr.bf16.gmra.mxu0 %v2041_v46 }
 0x2e0   : > { %v1945_v50 = vadd.f32 %v1944_v48, %v3881_v21  ;;  %v2010_v56 = vmax.f32 %v1943_v49, 0.0 }
 0x2e1   : > { %v1946_v52 = vpop.f32.mrf.mxu1 }
 0x2e2   : > { %v1947_v53 = vadd.f32 %v1946_v52, %v3878_v28  ;;  %v2011_v55 = vmax.f32 %v1945_v50, 0.0 }
 0x2e4   : > { %v2012_v58 = vmax.f32 %v1947_v53, 0.0  ;;  %v2043_v0 = vpack.c.bf16 %v2011_v55, %v2009_v59 }
 0x2e6   : > { %v2044_v60 = vpack.c.bf16 %v2012_v58, %v2010_v56 }
 0x2e8   : > { %2332 = vmatprep.mubr.bf16.mxu0 %v2044_v60 }
 0x2e9   : > { %2333 = vmatmul.mubr.bf16.gmra.mxu0 %v2043_v0 }
 0x2f7   : > { %v2761_v61 = vpop.f32.mrf.mxu0 }
 0x2f9   : > { %v2762_v2 = vpop.f32.mrf.mxu0 }
 0x2fa   : > { %v2763_v4 = vadd.f32 %v2762_v2, %v2761_v61 }
 0x2fb   : > { %v2764_v21 = vpop.f32.mrf.mxu0 }
 0x2fc   : > { %v2215_v5 = vadd.f32 %v2763_v4, %v3950_v62 }
 0x2fd   : > { %v2765_v28 = vpop.f32.mrf.mxu0 }
 0x2fe   : > { %v2711_v6 = vmul.f32 -1.442695, %v2215_v5  ;;  %v2766_v7 = vadd.f32 %v2765_v28, %v2764_v21 }
 0x300   : > { %3052 = vpow2.f32 %v2711_v6  ;;  %v2218_v8 = vadd.f32 %v2766_v7, %v3950_v62 }
 0x301   : > { %v2767_v9 = vpop.f32.mrf.mxu0 }
 0x302   : > { %v2712_v14 = vmul.f32 -1.442695, %v2218_v8 }
 0x303   : > { %v2768_v15 = vpop.f32.mrf.mxu0 }
 0x304   : > { %v2769_v16 = vadd.f32 %v2768_v15, %v2767_v9  ;;  %3054 = vpow2.f32 %v2712_v14 }
 0x305   : > { %v2770_v17 = vpop.f32.mrf.mxu0 }
 0x306   : > { %v2223_v18 = vadd.f32 %v2769_v16, %v3950_v62 }
 0x307   : > { %v2771_v19 = vpop.f32.mrf.mxu0 }
 0x308   : > { %v2713_v20 = vmul.f32 -1.442695, %v2223_v18  ;;  %v2772_v22 = vadd.f32 %v2771_v19, %v2770_v17 }
 0x30a   : > { %3056 = vpow2.f32 %v2713_v20  ;;  %v2226_v12 = vadd.f32 %v2772_v22, %v3950_v62 }
 0x30c   : > { %v2714_v23 = vmul.f32 -1.442695, %v2226_v12 }
 0x30d   : > { %v3053_v13 = vpop.eup %3052 }
 0x30e   : > { %3058 = vpow2.f32 %v2714_v23  ;;  %v2437_v24 = vadd.f32 1.0, %v3053_v13 }
 0x30f   : > { %v2773_v10 = vpop.f32.mrf.mxu0 }
 0x310   : > { %3060 = vrcp.f32 %v2437_v24 }
 0x311   : > { %v2774_v11 = vpop.f32.mrf.mxu0  ;;  %v3055_v25 = vpop.eup %3054 }
 0x312   : > { %v2775_v27 = vadd.f32 %v2774_v11, %v2773_v10  ;;  %v2438_v26 = vadd.f32 1.0, %v3055_v25 }
 0x313   : > { %v2776_v29 = vpop.f32.mrf.mxu0 }
 0x314   : > { %v2231_v30 = vadd.f32 %v2775_v27, %v3950_v62  ;;  %3062 = vrcp.f32 %v2438_v26 }
 0x315   : > { %v2777_v31 = vpop.f32.mrf.mxu0 }
 0x316   : > { %v2715_v32 = vmul.f32 -1.442695, %v2231_v30  ;;  %v2778_v33 = vadd.f32 %v2777_v31, %v2776_v29 }
 0x317   : > { %v3057_v34 = vpop.eup %3056 }
 0x318   : > { %v2439_v35 = vadd.f32 1.0, %v3057_v34  ;;  %3064 = vpow2.f32 %v2715_v32  ;;  %v2234_v54 = vadd.f32 %v2778_v33, %v3950_v62 }
 0x319   : > { %v2779_v36 = vpop.f32.mrf.mxu0 }
 0x31a   : > { %3066 = vrcp.f32 %v2439_v35  ;;  %v2716_v57 = vmul.f32 -1.442695, %v2234_v54 }
 0x31b   : > { %v3059_v63 = vpop.eup %3058  ;;  %v2780_v37 = vpop.f32.mrf.mxu0 }
 0x31c   : > { %v2440_v38 = vadd.f32 1.0, %v3059_v63  ;;  %3068 = vpow2.f32 %v2716_v57  ;;  %v2781_v3 = vadd.f32 %v2780_v37, %v2779_v36 }
 0x31d   : > { %v2782_v39 = vpop.f32.mrf.mxu0  ;;  %v3061_v40 = vpop.eup %3060 }
 0x31e   : > { %3070 = vrcp.f32 %v2440_v38  ;;  %v2239_v41 = vadd.f32 %v2781_v3, %v3950_v62  ;;  %2533 = vst [vmem:[%s3963_s29] sm:$0xff] %v3061_v40 }
 0x31f   : > { %v2783_v42 = vpop.f32.mrf.mxu0 }
 0x320   : > { %v2717_v43 = vmul.f32 -1.442695, %v2239_v41  ;;  %v2784_v44 = vadd.f32 %v2783_v42, %v2782_v39 }
 0x321   : > { %v3063_v45 = vpop.eup %3062 }
 0x322   : > { %3072 = vpow2.f32 %v2717_v43  ;;  %v2242_v1 = vadd.f32 %v2784_v44, %v3950_v62  ;;  %2534 = vst [vmem:[%s3963_s29 + $0x8] sm:$0xff] %v3063_v45 }
 0x324   : > { %v2718_v46 = vmul.f32 -1.442695, %v2242_v1 }
 0x325   : > { %v3065_v47 = vpop.eup %3064 }
 0x326   : > { %v2441_v48 = vadd.f32 1.0, %v3065_v47  ;;  %3074 = vpow2.f32 %v2718_v46 }
 0x327   : > { %v3067_v49 = vpop.eup %3066  ;;  %v2785_v50 = vpop.f32.mrf.mxu0 }
 0x328   : > { %2535 = vst [vmem:[%s3963_s29 + $0x10] sm:$0xff] %v3067_v49  ;;  %3076 = vrcp.f32 %v2441_v48 }
 0x329   : > { %v3069_v51 = vpop.eup %3068  ;;  %v2786_v52 = vpop.f32.mrf.mxu0 }
 0x32a   : > { %v2442_v53 = vadd.f32 1.0, %v3069_v51  ;;  %v2787_v55 = vadd.f32 %v2786_v52, %v2785_v50 }
 0x32b   : > { %v3071_v56 = vpop.eup %3070  ;;  %v2788_v58 = vpop.f32.mrf.mxu0 }
 0x32c   : > { %2536 = vst [vmem:[%s3963_s29 + $0x18] sm:$0xff] %v3071_v56  ;;  %3078 = vrcp.f32 %v2442_v53  ;;  %v2247_v59 = vadd.f32 %v2787_v55, %v3950_v62 }
 0x32d   : > { %v2789_v60 = vpop.f32.mrf.mxu0 }
 0x32e   : > { %v2719_v0 = vmul.f32 -1.442695, %v2247_v59  ;;  %v2790_v61 = vadd.f32 %v2789_v60, %v2788_v58 }
 0x32f   : > { %v3073_v2 = vpop.eup %3072 }
 0x330   : > { %v2443_v4 = vadd.f32 1.0, %v3073_v2  ;;  %3080 = vpow2.f32 %v2719_v0  ;;  %v2250_v21 = vadd.f32 %v2790_v61, %v3950_v62 }
 0x331   : > { %v2791_v5 = vpop.f32.mrf.mxu0 }
 0x332   : > { %3082 = vrcp.f32 %v2443_v4  ;;  %v2720_v28 = vmul.f32 -1.442695, %v2250_v21 }
 0x333   : > { %v3075_v6 = vpop.eup %3074  ;;  %v2792_v7 = vpop.f32.mrf.mxu0 }
 0x334   : > { %v2444_v8 = vadd.f32 1.0, %v3075_v6  ;;  %3084 = vpow2.f32 %v2720_v28  ;;  %v2793_v9 = vadd.f32 %v2792_v7, %v2791_v5 }
 0x335   : > { %v3077_v14 = vpop.eup %3076  ;;  %v2794_v15 = vpop.f32.mrf.mxu0 }
 0x336   : > { %2537 = vst [vmem:[%s3963_s29 + $0x20] sm:$0xff] %v3077_v14  ;;  %3086 = vrcp.f32 %v2444_v8  ;;  %v2255_v16 = vadd.f32 %v2793_v9, %v3950_v62 }
 0x337   : > { %v2795_v17 = vpop.f32.mrf.mxu0 }
 0x338   : > { %v2721_v18 = vmul.f32 -1.442695, %v2255_v16  ;;  %v2796_v19 = vadd.f32 %v2795_v17, %v2794_v15 }
 0x339   : > { %v3079_v20 = vpop.eup %3078 }
 0x33a   : > { %2538 = vst [vmem:[%s3963_s29 + $0x28] sm:$0xff] %v3079_v20  ;;  %3088 = vpow2.f32 %v2721_v18  ;;  %v2258_v22 = vadd.f32 %v2796_v19, %v3950_v62 }
 0x33c   : > { %v2722_v12 = vmul.f32 -1.442695, %v2258_v22 }
 0x33d   : > { %v3081_v23 = vpop.eup %3080 }
 0x33e   : > { %v2445_v13 = vadd.f32 1.0, %v3081_v23  ;;  %3090 = vpow2.f32 %v2722_v12 }
 0x33f   : > { %v3083_v24 = vpop.eup %3082  ;;  %v2797_v10 = vpop.f32.mrf.mxu0 }
 0x340   : > { %2539 = vst [vmem:[%s3963_s29 + $0x30] sm:$0xff] %v3083_v24  ;;  %3092 = vrcp.f32 %v2445_v13 }
 0x341   : > { %v3085_v11 = vpop.eup %3084  ;;  %v2798_v25 = vpop.f32.mrf.mxu0 }
 0x342   : > { %v2446_v27 = vadd.f32 1.0, %v3085_v11  ;;  %v2799_v26 = vadd.f32 %v2798_v25, %v2797_v10 }
 0x343   : > { %v3087_v29 = vpop.eup %3086  ;;  %v2800_v30 = vpop.f32.mrf.mxu0 }
 0x344   : > { %2540 = vst [vmem:[%s3963_s29 + $0x38] sm:$0xff] %v3087_v29  ;;  %3094 = vrcp.f32 %v2446_v27  ;;  %v2263_v31 = vadd.f32 %v2799_v26, %v3950_v62 }
 0x345   : > { %v2801_v32 = vpop.f32.mrf.mxu0 }
 0x346   : > { %v2723_v33 = vmul.f32 -1.442695, %v2263_v31  ;;  %v2802_v34 = vadd.f32 %v2801_v32, %v2800_v30 }
 0x347   : > { %v3089_v35 = vpop.eup %3088 }
 0x348   : > { %v2447_v54 = vadd.f32 1.0, %v3089_v35  ;;  %3096 = vpow2.f32 %v2723_v33  ;;  %v2266_v36 = vadd.f32 %v2802_v34, %v3950_v62 }
 0x349   : > { %v2803_v57 = vpop.f32.mrf.mxu0 }
 0x34a   : > { %3098 = vrcp.f32 %v2447_v54  ;;  %v2724_v63 = vmul.f32 -1.442695, %v2266_v36 }
 0x34b   : > { %v3091_v37 = vpop.eup %3090  ;;  %v2804_v38 = vpop.f32.mrf.mxu0 }
 0x34c   : > { %v2448_v3 = vadd.f32 1.0, %v3091_v37  ;;  %3100 = vpow2.f32 %v2724_v63  ;;  %v2805_v39 = vadd.f32 %v2804_v38, %v2803_v57 }
 0x34d   : > { %v3093_v40 = vpop.eup %3092  ;;  %v2806_v41 = vpop.f32.mrf.mxu0 }
 0x34e   : > { %2541 = vst [vmem:[%s3963_s29 + $0x40] sm:$0xff] %v3093_v40  ;;  %3102 = vrcp.f32 %v2448_v3  ;;  %v2271_v42 = vadd.f32 %v2805_v39, %v3950_v62 }
 0x34f   : > { %v2807_v43 = vpop.f32.mrf.mxu0 }
 0x350   : > { %v2725_v44 = vmul.f32 -1.442695, %v2271_v42  ;;  %v2808_v45 = vadd.f32 %v2807_v43, %v2806_v41 }
 0x351   : > { %v3095_v1 = vpop.eup %3094 }
 0x352   : > { %2542 = vst [vmem:[%s3963_s29 + $0x48] sm:$0xff] %v3095_v1  ;;  %3104 = vpow2.f32 %v2725_v44  ;;  %v2274_v46 = vadd.f32 %v2808_v45, %v3950_v62 }
 0x354   : > { %v2726_v47 = vmul.f32 -1.442695, %v2274_v46 }
 0x355   : > { %v3097_v48 = vpop.eup %3096 }
 0x356   : > { %v2449_v49 = vadd.f32 1.0, %v3097_v48  ;;  %3106 = vpow2.f32 %v2726_v47 }
 0x357   : > { %v3099_v50 = vpop.eup %3098  ;;  %v2809_v51 = vpop.f32.mrf.mxu0 }
 0x358   : > { %2543 = vst [vmem:[%s3963_s29 + $0x50] sm:$0xff] %v3099_v50  ;;  %3108 = vrcp.f32 %v2449_v49 }
 0x359   : > { %v3101_v52 = vpop.eup %3100  ;;  %v2810_v53 = vpop.f32.mrf.mxu0 }
 0x35a   : > { %v2450_v55 = vadd.f32 1.0, %v3101_v52  ;;  %v2811_v56 = vadd.f32 %v2810_v53, %v2809_v51 }
 0x35b   : > { %v3103_v58 = vpop.eup %3102  ;;  %v2812_v59 = vpop.f32.mrf.mxu0 }
 0x35c   : > { %2544 = vst [vmem:[%s3963_s29 + $0x58] sm:$0xff] %v3103_v58  ;;  %3110 = vrcp.f32 %v2450_v55  ;;  %v2279_v60 = vadd.f32 %v2811_v56, %v3950_v62 }
 0x35d   : > { %v2813_v0 = vpop.f32.mrf.mxu0 }
 0x35e   : > { %v2727_v61 = vmul.f32 -1.442695, %v2279_v60  ;;  %v2814_v2 = vadd.f32 %v2813_v0, %v2812_v59 }
 0x35f   : > { %v3105_v4 = vpop.eup %3104 }
 0x360   : > { %v2451_v21 = vadd.f32 1.0, %v3105_v4  ;;  %3112 = vpow2.f32 %v2727_v61  ;;  %v2282_v5 = vadd.f32 %v2814_v2, %v3950_v62 }
 0x361   : > { %v2815_v28 = vpop.f32.mrf.mxu0 }
 0x362   : > { %3114 = vrcp.f32 %v2451_v21  ;;  %v2728_v6 = vmul.f32 -1.442695, %v2282_v5 }
 0x363   : > { %v3107_v7 = vpop.eup %3106  ;;  %v2816_v8 = vpop.f32.mrf.mxu0 }
 0x364   : > { %v2452_v9 = vadd.f32 1.0, %v3107_v7  ;;  %3116 = vpow2.f32 %v2728_v6  ;;  %v2817_v14 = vadd.f32 %v2816_v8, %v2815_v28 }
 0x365   : > { %v3109_v15 = vpop.eup %3108  ;;  %v2818_v16 = vpop.f32.mrf.mxu0 }
 0x366   : > { %2545 = vst [vmem:[%s3963_s29 + $0x60] sm:$0xff] %v3109_v15  ;;  %3118 = vrcp.f32 %v2452_v9  ;;  %v2287_v17 = vadd.f32 %v2817_v14, %v3950_v62 }
 0x367   : > { %v2819_v18 = vpop.f32.mrf.mxu0 }
 0x368   : > { %v2729_v19 = vmul.f32 -1.442695, %v2287_v17  ;;  %v2820_v20 = vadd.f32 %v2819_v18, %v2818_v16 }
 0x369   : > { %v3111_v22 = vpop.eup %3110 }
 0x36a   : > { %2546 = vst [vmem:[%s3963_s29 + $0x68] sm:$0xff] %v3111_v22  ;;  %3120 = vpow2.f32 %v2729_v19  ;;  %v2290_v12 = vadd.f32 %v2820_v20, %v3950_v62 }
 0x36c   : > { %v2730_v23 = vmul.f32 -1.442695, %v2290_v12 }
 0x36d   : > { %v3113_v13 = vpop.eup %3112 }
 0x36e   : > { %v2453_v24 = vadd.f32 1.0, %v3113_v13  ;;  %3122 = vpow2.f32 %v2730_v23 }
 0x36f   : > { %v3115_v10 = vpop.eup %3114  ;;  %v2821_v11 = vpop.f32.mrf.mxu0 }
 0x370   : > { %2547 = vst [vmem:[%s3963_s29 + $0x70] sm:$0xff] %v3115_v10  ;;  %3124 = vrcp.f32 %v2453_v24 }
 0x371   : > { %v3117_v25 = vpop.eup %3116  ;;  %v2822_v27 = vpop.f32.mrf.mxu0 }
 0x372   : > { %v2454_v26 = vadd.f32 1.0, %v3117_v25  ;;  %v2823_v29 = vadd.f32 %v2822_v27, %v2821_v11 }
 0x373   : > { %v3119_v30 = vpop.eup %3118  ;;  %v2824_v31 = vpop.f32.mrf.mxu0 }
 0x374   : > { %2548 = vst [vmem:[%s3963_s29 + $0x78] sm:$0xff] %v3119_v30  ;;  %3126 = vrcp.f32 %v2454_v26  ;;  %v2295_v32 = vadd.f32 %v2823_v29, %v3950_v62 }
 0x375   : > { %v2825_v33 = vpop.f32.mrf.mxu0 }
 0x376   : > { %v2731_v34 = vmul.f32 -1.442695, %v2295_v32  ;;  %v2826_v35 = vadd.f32 %v2825_v33, %v2824_v31 }
 0x377   : > { %v3121_v54 = vpop.eup %3120 }
 0x378   : > { %v2455_v36 = vadd.f32 1.0, %v3121_v54  ;;  %3128 = vpow2.f32 %v2731_v34  ;;  %v2298_v57 = vadd.f32 %v2826_v35, %v3950_v62 }
 0x379   : > { %v2827_v63 = vpop.f32.mrf.mxu0 }
 0x37a   : > { %3130 = vrcp.f32 %v2455_v36  ;;  %v2732_v37 = vmul.f32 -1.442695, %v2298_v57 }
 0x37b   : > { %v3123_v38 = vpop.eup %3122  ;;  %v2828_v3 = vpop.f32.mrf.mxu0 }
 0x37c   : > { %v2456_v39 = vadd.f32 1.0, %v3123_v38  ;;  %3132 = vpow2.f32 %v2732_v37  ;;  %v2829_v40 = vadd.f32 %v2828_v3, %v2827_v63 }
 0x37d   : > { %v3125_v41 = vpop.eup %3124  ;;  %v2830_v42 = vpop.f32.mrf.mxu0 }
 0x37e   : > { %2549 = vst [vmem:[%s3963_s29 + $0x80] sm:$0xff] %v3125_v41  ;;  %3134 = vrcp.f32 %v2456_v39  ;;  %v2303_v43 = vadd.f32 %v2829_v40, %v3950_v62 }
 0x37f   : > { %v2831_v44 = vpop.f32.mrf.mxu0 }
 0x380   : > { %v2733_v45 = vmul.f32 -1.442695, %v2303_v43  ;;  %v2832_v1 = vadd.f32 %v2831_v44, %v2830_v42 }
 0x381   : > { %v3127_v46 = vpop.eup %3126 }
 0x382   : > { %2550 = vst [vmem:[%s3963_s29 + $0x88] sm:$0xff] %v3127_v46  ;;  %3136 = vpow2.f32 %v2733_v45  ;;  %v2306_v47 = vadd.f32 %v2832_v1, %v3950_v62 }
 0x384   : > { %v2734_v48 = vmul.f32 -1.442695, %v2306_v47 }
 0x385   : > { %v3129_v49 = vpop.eup %3128 }
 0x386   : > { %v2457_v50 = vadd.f32 1.0, %v3129_v49  ;;  %3138 = vpow2.f32 %v2734_v48 }
 0x387   : > { %v3131_v51 = vpop.eup %3130  ;;  %v2833_v52 = vpop.f32.mrf.mxu0 }
 0x388   : > { %2551 = vst [vmem:[%s3963_s29 + $0x90] sm:$0xff] %v3131_v51  ;;  %3140 = vrcp.f32 %v2457_v50 }
 0x389   : > { %v3133_v53 = vpop.eup %3132  ;;  %v2834_v55 = vpop.f32.mrf.mxu0 }
 0x38a   : > { %v2458_v56 = vadd.f32 1.0, %v3133_v53  ;;  %v2835_v58 = vadd.f32 %v2834_v55, %v2833_v52 }
 0x38b   : > { %v3135_v59 = vpop.eup %3134  ;;  %v2836_v60 = vpop.f32.mrf.mxu0 }
 0x38c   : > { %2552 = vst [vmem:[%s3963_s29 + $0x98] sm:$0xff] %v3135_v59  ;;  %3142 = vrcp.f32 %v2458_v56  ;;  %v2311_v0 = vadd.f32 %v2835_v58, %v3950_v62 }
 0x38d   : > { %v2837_v61 = vpop.f32.mrf.mxu0 }
 0x38e   : > { %v2735_v2 = vmul.f32 -1.442695, %v2311_v0  ;;  %v2838_v4 = vadd.f32 %v2837_v61, %v2836_v60 }
 0x38f   : > { %v3137_v21 = vpop.eup %3136 }
 0x390   : > { %v2459_v5 = vadd.f32 1.0, %v3137_v21  ;;  %3144 = vpow2.f32 %v2735_v2  ;;  %v2314_v28 = vadd.f32 %v2838_v4, %v3950_v62 }
 0x391   : > { %v2839_v6 = vpop.f32.mrf.mxu0 }
 0x392   : > { %3146 = vrcp.f32 %v2459_v5  ;;  %v2736_v7 = vmul.f32 -1.442695, %v2314_v28 }
 0x393   : > { %v3139_v8 = vpop.eup %3138  ;;  %v2840_v9 = vpop.f32.mrf.mxu0 }
 0x394   : > { %v2460_v14 = vadd.f32 1.0, %v3139_v8  ;;  %3148 = vpow2.f32 %v2736_v7  ;;  %v2841_v15 = vadd.f32 %v2840_v9, %v2839_v6 }
 0x395   : > { %v3141_v16 = vpop.eup %3140  ;;  %v2842_v17 = vpop.f32.mrf.mxu0 }
 0x396   : > { %2553 = vst [vmem:[%s3963_s29 + $0xa0] sm:$0xff] %v3141_v16  ;;  %3150 = vrcp.f32 %v2460_v14  ;;  %v2319_v18 = vadd.f32 %v2841_v15, %v3950_v62 }
 0x397   : > { %v2843_v19 = vpop.f32.mrf.mxu0 }
 0x398   : > { %v2737_v20 = vmul.f32 -1.442695, %v2319_v18  ;;  %v2844_v22 = vadd.f32 %v2843_v19, %v2842_v17 }
 0x399   : > { %v3143_v12 = vpop.eup %3142 }
 0x39a   : > { %2554 = vst [vmem:[%s3963_s29 + $0xa8] sm:$0xff] %v3143_v12  ;;  %3152 = vpow2.f32 %v2737_v20  ;;  %v2322_v23 = vadd.f32 %v2844_v22, %v3950_v62 }
 0x39c   : > { %v2738_v13 = vmul.f32 -1.442695, %v2322_v23 }
 0x39d   : > { %v3145_v24 = vpop.eup %3144 }
 0x39e   : > { %v2461_v10 = vadd.f32 1.0, %v3145_v24  ;;  %3154 = vpow2.f32 %v2738_v13 }
 0x39f   : > { %v3147_v11 = vpop.eup %3146  ;;  %v2845_v25 = vpop.f32.mrf.mxu0 }
 0x3a0   : > { %2555 = vst [vmem:[%s3963_s29 + $0xb0] sm:$0xff] %v3147_v11  ;;  %3156 = vrcp.f32 %v2461_v10 }
 0x3a1   : > { %v3149_v27 = vpop.eup %3148  ;;  %v2846_v26 = vpop.f32.mrf.mxu0 }
 0x3a2   : > { %v2462_v29 = vadd.f32 1.0, %v3149_v27  ;;  %v2847_v30 = vadd.f32 %v2846_v26, %v2845_v25 }
 0x3a3   : > { %v3151_v31 = vpop.eup %3150  ;;  %v2848_v32 = vpop.f32.mrf.mxu0 }
 0x3a4   : > { %2556 = vst [vmem:[%s3963_s29 + $0xb8] sm:$0xff] %v3151_v31  ;;  %3158 = vrcp.f32 %v2462_v29  ;;  %v2327_v33 = vadd.f32 %v2847_v30, %v3950_v62 }
 0x3a5   : > { %v2849_v34 = vpop.f32.mrf.mxu0 }
 0x3a6   : > { %v2739_v35 = vmul.f32 -1.442695, %v2327_v33  ;;  %v2850_v54 = vadd.f32 %v2849_v34, %v2848_v32 }
 0x3a7   : > { %v3153_v36 = vpop.eup %3152 }
 0x3a8   : > { %v2463_v57 = vadd.f32 1.0, %v3153_v36  ;;  %3160 = vpow2.f32 %v2739_v35  ;;  %v2330_v63 = vadd.f32 %v2850_v54, %v3950_v62 }
 0x3a9   : > { %v2851_v37 = vpop.f32.mrf.mxu0 }
 0x3aa   : > { %3162 = vrcp.f32 %v2463_v57  ;;  %v2740_v38 = vmul.f32 -1.442695, %v2330_v63 }
 0x3ab   : > { %v3155_v3 = vpop.eup %3154  ;;  %v2852_v39 = vpop.f32.mrf.mxu0 }
 0x3ac   : > { %v2464_v40 = vadd.f32 1.0, %v3155_v3  ;;  %3164 = vpow2.f32 %v2740_v38  ;;  %v2853_v41 = vadd.f32 %v2852_v39, %v2851_v37 }
 0x3ad   : > { %v3157_v42 = vpop.eup %3156  ;;  %v2854_v43 = vpop.f32.mrf.mxu0 }
 0x3ae   : > { %2557 = vst [vmem:[%s3963_s29 + $0xc0] sm:$0xff] %v3157_v42  ;;  %3166 = vrcp.f32 %v2464_v40  ;;  %v2335_v44 = vadd.f32 %v2853_v41, %v3950_v62 }
 0x3af   : > { %v2855_v45 = vpop.f32.mrf.mxu0 }
 0x3b0   : > { %v2741_v1 = vmul.f32 -1.442695, %v2335_v44  ;;  %v2856_v46 = vadd.f32 %v2855_v45, %v2854_v43 }
 0x3b1   : > { %v3159_v47 = vpop.eup %3158 }
 0x3b2   : > { %2558 = vst [vmem:[%s3963_s29 + $0xc8] sm:$0xff] %v3159_v47  ;;  %3168 = vpow2.f32 %v2741_v1  ;;  %v2338_v48 = vadd.f32 %v2856_v46, %v3950_v62 }
 0x3b4   : > { %v2742_v49 = vmul.f32 -1.442695, %v2338_v48 }
 0x3b5   : > { %v3161_v50 = vpop.eup %3160 }
 0x3b6   : > { %v2465_v51 = vadd.f32 1.0, %v3161_v50  ;;  %3170 = vpow2.f32 %v2742_v49 }
 0x3b7   : > { %v3163_v52 = vpop.eup %3162 }
 0x3b8   : > { %2559 = vst [vmem:[%s3963_s29 + $0xd0] sm:$0xff] %v3163_v52  ;;  %3172 = vrcp.f32 %v2465_v51 }
 0x3b9   : > { %v3165_v53 = vpop.eup %3164 }
 0x3ba   : > { %v2466_v55 = vadd.f32 1.0, %v3165_v53 }
 0x3bb   : > { %v3167_v56 = vpop.eup %3166 }
 0x3bc   : > { %2560 = vst [vmem:[%s3963_s29 + $0xd8] sm:$0xff] %v3167_v56  ;;  %3174 = vrcp.f32 %v2466_v55 }
 0x3bf   : > { %v3169_v58 = vpop.eup %3168 }
 0x3c0   : > { %v2467_v59 = vadd.f32 1.0, %v3169_v58 }
 0x3c2   : > { %3176 = vrcp.f32 %v2467_v59 }
 0x3c3   : > { %v3171_v62 = vpop.eup %3170 }
 0x3c4   : > { %v2468_v60 = vadd.f32 1.0, %v3171_v62 }
 0x3c5   : > { %v3173_v0 = vpop.eup %3172 }
 0x3c6   : > { %2561 = vst [vmem:[%s3963_s29 + $0xe0] sm:$0xff] %v3173_v0  ;;  %3178 = vrcp.f32 %v2468_v60 }
 0x3c9   : > { %v3175_v61 = vpop.eup %3174 }
 0x3ca   : > { %2562 = vst [vmem:[%s3963_s29 + $0xe8] sm:$0xff] %v3175_v61 }
 0x3cf   : > { %v3177_v2 = vpop.eup %3176 }
 0x3d0   : > { %2563 = vst [vmem:[%s3963_s29 + $0xf0] sm:$0xff] %v3177_v2 }
 0x3d3   : > { %v3179_v4 = vpop.eup %3178 }
 0x3d4   : > { %2564 = vst [vmem:[%s3963_s29 + $0xf8] sm:$0xff] %v3179_v4 }
 0x3d5 PF: > { %s19_s30 = sadd.s32 1, %s3186_s30  }
 0x3d6   : > { %p16_p4 = scmp.ge.s32.totalorder %s19_s30, 4  }
 0x3d8   :  { %18 = sbr.rel (!%p16_p4) target bundleno = 1 (0x1), region = 86 }

</bundles_post_ra>
